<compile_context>
chip_gen: v7x
topology: tpu7x:2x2x1
jax: 0.10.0
libtpu: 0.0.40
codegen_flags: <defaults>
</compile_context>

<pallas_src>
import jax
import jax.numpy as jnp
import numpy as np
from jax import lax
from jax.experimental import pallas as pl
from jax.experimental.pallas import tpu as pltpu


def _round_up(n, m):
    return ((n + m - 1) // m) * m


# ----------------------------------------------------------------------------
# Pallas kernel: full Decoder forward (LSTM1 -> LSTM2 -> Linear) over T steps.
# ----------------------------------------------------------------------------
def decoder_kernel(x_ref,            # (Bp, D)         single (repeated) input
                   wih1_ref,         # (D, 4*H1)       gate cols = [i,f,o,g]
                   whh1_ref,         # (H1, 4*H1)
                   b1_ref,           # (1, 4*H1)       b_ih1 + b_hh1
                   wih2_ref,         # (H1, 4*H2)
                   whh2_ref,         # (H2, 4*H2)
                   b2_ref,           # (1, 4*H2)       b_ih2 + b_hh2
                   wout_ref,         # (H2, Fp)        lane-padded
                   bout_ref,         # (1, Fp)
                   out_ref):         # (T*Bp, Fp)      time-major flattened out
    Bp = x_ref.shape[0]
    H1 = whh1_ref.shape[0]
    H2 = whh2_ref.shape[0]
    T = out_ref.shape[0] // Bp

    def gate_act(gates, c, H):
        # Gate columns pre-permuted to [i | f | o | g]: one sigmoid over the
        # contiguous 3H slice, one tanh over the trailing H.
        ifo = jax.nn.sigmoid(gates[:, :3 * H])
        g = jnp.tanh(gates[:, 3 * H:])
        i = ifo[:, 0 * H:1 * H]
        f = ifo[:, 1 * H:2 * H]
        o = ifo[:, 2 * H:3 * H]
        c_new = f * c + i * g
        h_new = o * jnp.tanh(c_new)
        return h_new, c_new

    # x is repeated along T, so the layer-1 input projection (and its bias)
    # is identical every step: compute it once, off the recurrence chain.
    xw1 = (jnp.dot(x_ref[...], wih1_ref[...],
                   preferred_element_type=jnp.float32)
           + b1_ref[...])                                    # (Bp, 4*H1)

    # ---- Pass 1: layer-1 recurrence (state in vregs, fully unrolled) -------
    # TODO(synk): for large T switch to lax.fori_loop(unroll=2..4) + scratch.
    h1 = jnp.zeros((Bp, H1), jnp.float32)
    c1 = jnp.zeros((Bp, H1), jnp.float32)
    h1_steps = []
    for t in range(T):                        # T is static -> full unroll
        rec1 = jnp.dot(h1, whh1_ref[...], preferred_element_type=jnp.float32)
        h1, c1 = gate_act(xw1 + rec1, c1, H1)
        h1_steps.append(h1)

    # Layer-2 input projection, batched over all steps (pure throughput work
    # off the layer-2 recurrence).  Bp = 8 -> sublane-aligned concat.
    h1_all = jnp.concatenate(h1_steps, axis=0)               # (T*Bp, H1)
    proj2 = (jnp.dot(h1_all, wih2_ref[...],
                     preferred_element_type=jnp.float32)
             + b2_ref[...])                                  # (T*Bp, 4*H2)

    # ---- Pass 2: layer-2 recurrence (only the whh2 matmul per step) --------
    h2 = jnp.zeros((Bp, H2), jnp.float32)
    c2 = jnp.zeros((Bp, H2), jnp.float32)
    h2_steps = []
    for t in range(T):
        rec2 = jnp.dot(h2, whh2_ref[...], preferred_element_type=jnp.float32)
        h2, c2 = gate_act(proj2[t * Bp:(t + 1) * Bp, :] + rec2, c2, H2)
        h2_steps.append(h2)

    # ---- Deferred output projection: one batched, lane-dense matmul --------
    h2_all = jnp.concatenate(h2_steps, axis=0)               # (T*Bp, H2)
    out = (jnp.dot(h2_all, wout_ref[...],
                   preferred_element_type=jnp.float32)
           + bout_ref[...])                                  # (T*Bp, Fp)
    out_ref[...] = out.astype(out_ref.dtype)                 # dense, unmasked


# ----------------------------------------------------------------------------
# Wrapper-side parameter prep (free, one-off): gate reorder + output padding
# ----------------------------------------------------------------------------
def _permute_gate_cols(a, H):
    # PyTorch gate order [i|f|g|o] -> kernel order [i|f|o|g] along last axis.
    return jnp.concatenate(
        [a[..., :2 * H], a[..., 3 * H:4 * H], a[..., 2 * H:3 * H]], axis=-1)


def _prep_kernel_params(params):
    H1 = params["w_hh1"].shape[0]
    H2 = params["w_hh2"].shape[0]
    F = params["w_out"].shape[1]
    F_pad = _round_up(F, 128)
    kp = {
        "w_ih1": _permute_gate_cols(params["w_ih1"], H1),
        "w_hh1": _permute_gate_cols(params["w_hh1"], H1),
        "b1":    _permute_gate_cols(params["b1"], H1),
        "w_ih2": _permute_gate_cols(params["w_ih2"], H2),
        "w_hh2": _permute_gate_cols(params["w_hh2"], H2),
        "b2":    _permute_gate_cols(params["b2"], H2),
        # lane-dense output: zero-pad F up to a multiple of 128
        "w_out": jnp.pad(params["w_out"], ((0, 0), (0, F_pad - F))),
        "b_out": jnp.pad(params["b_out"], ((0, 0), (0, F_pad - F))),
    }
    return kp, F, F_pad


# ----------------------------------------------------------------------------
# Wrapper
# ----------------------------------------------------------------------------
def decoder_forward(x, y, params):
    """x: (B, 1, D) float32, y: python int (sequence length)."""
    B, one, D = x.shape
    assert one == 1
    T = int(y)

    # Pad batch to a full sublane tile (8 rows): aligned in-kernel concats and
    # unmasked full-vreg stores; padding rows are zero and sliced off below.
    B_pad = max(8, _round_up(B, 8))
    x2d = jnp.zeros((B_pad, D), x.dtype).at[:B].set(x[:, 0, :])

    kp, F, F_pad = _prep_kernel_params(params)

    vmem = pl.BlockSpec(memory_space=pltpu.MemorySpace.VMEM)
    out_flat = pl.pallas_call(
        decoder_kernel,
        out_shape=jax.ShapeDtypeStruct((T * B_pad, F_pad), jnp.float32),
        in_specs=[vmem] * 9,
        out_specs=vmem,
    )(
        x2d,
        kp["w_ih1"], kp["w_hh1"], kp["b1"],
        kp["w_ih2"], kp["w_hh2"], kp["b2"],
        kp["w_out"], kp["b_out"],
    )

    # time-major flattened (t*B_pad + b, F_pad) -> (B, T, F), drop padding.
    return jnp.transpose(out_flat.reshape(T, B_pad, F_pad)[:, :B, :F],
                         (1, 0, 2))


# ----------------------------------------------------------------------------
# Deterministic parameter init (PyTorch LSTM/Linear shape conventions)
# ----------------------------------------------------------------------------
def init_params(key, input_dim, n_features):
    D = input_dim
    H1 = D
    H2 = 2 * D
    ks = jax.random.split(key, 12)

    def u(k, shape, fan):
        bound = 1.0 / np.sqrt(fan)
        return jax.random.uniform(k, shape, jnp.float32, -bound, bound)

    # rnn1: LSTM(D -> H1)
    w_ih1 = u(ks[0], (4 * H1, D), H1)      # PyTorch (4H, in), gates i,f,g,o
    w_hh1 = u(ks[1], (4 * H1, H1), H1)
    b_ih1 = u(ks[2], (4 * H1,), H1)
    b_hh1 = u(ks[3], (4 * H1,), H1)
    # rnn2: LSTM(H1 -> H2)
    w_ih2 = u(ks[4], (4 * H2, H1), H2)
    w_hh2 = u(ks[5], (4 * H2, H2), H2)
    b_ih2 = u(ks[6], (4 * H2,), H2)
    b_hh2 = u(ks[7], (4 * H2,), H2)
    # output_layer: Linear(H2 -> n_features)
    w_out = u(ks[8], (n_features, H2), H2)
    b_out = u(ks[9], (n_features,), H2)

    return {
        "w_ih1": w_ih1.T, "w_hh1": w_hh1.T, "b1": (b_ih1 + b_hh1)[None, :],
        "w_ih2": w_ih2.T, "w_hh2": w_hh2.T, "b2": (b_ih2 + b_hh2)[None, :],
        "w_out": w_out.T, "b_out": b_out[None, :],
    }


# ----------------------------------------------------------------------------
# Pure-JAX reference (same math, lax.scan, standard gate order)
# ----------------------------------------------------------------------------
def decoder_reference(x, y, params):
    B, _, D = x.shape
    T = int(y)
    H1, H2 = D, 2 * D
    x_rep = jnp.tile(x, (1, T, 1))

    def run_lstm(seq, wih, whh, b, H):
        def cell(carry, xt):
            h, c = carry
            gates = xt @ wih + h @ whh + b
            i = jax.nn.sigmoid(gates[:, 0 * H:1 * H])
            f = jax.nn.sigmoid(gates[:, 1 * H:2 * H])
            g = jnp.tanh(gates[:, 2 * H:3 * H])
            o = jax.nn.sigmoid(gates[:, 3 * H:4 * H])
            c = f * c + i * g
            h = o * jnp.tanh(c)
            return (h, c), h
        init = (jnp.zeros((B, H), jnp.float32), jnp.zeros((B, H), jnp.float32))
        _, hs = lax.scan(cell, init, jnp.transpose(seq, (1, 0, 2)))
        return jnp.transpose(hs, (1, 0, 2))

    h1 = run_lstm(x_rep, params["w_ih1"], params["w_hh1"], params["b1"], H1)
    h2 = run_lstm(h1, params["w_ih2"], params["w_hh2"], params["b2"], H2)
    return h2 @ params["w_out"] + params["b_out"]


if __name__ == "__main__":
    # Small shapes consistent with the module: input_dim=32 -> hidden=64,
    # n_features=64, batch=2, seq length y=8.
    B, D, T, F = 2, 32, 8, 64

    key = jax.random.PRNGKey(0)
    kx, kp = jax.random.split(key)
    x = jax.random.normal(kx, (B, 1, D), jnp.float32)   # (B, 1, input_dim)
    params = init_params(kp, input_dim=D, n_features=F)

    out = decoder_forward(x, T, params)
    out = jax.block_until_ready(out)

    ref = jax.block_until_ready(decoder_reference(x, T, params))
    assert out.shape == (B, T, F)
    np.testing.assert_allclose(np.asarray(out), np.asarray(ref),
                               rtol=1e-5, atol=1e-5)
    print("KERNEL_OK")
</pallas_src>

<mosaic_0001>
module attributes {stable_mosaic.version = 11 : i64} {
  func.func @decoder_kernel(%arg0: memref<8x32xf32, #tpu.memory_space<vmem>>, %arg1: memref<32x128xf32, #tpu.memory_space<vmem>>, %arg2: memref<32x128xf32, #tpu.memory_space<vmem>>, %arg3: memref<1x128xf32, #tpu.memory_space<vmem>>, %arg4: memref<32x256xf32, #tpu.memory_space<vmem>>, %arg5: memref<64x256xf32, #tpu.memory_space<vmem>>, %arg6: memref<1x256xf32, #tpu.memory_space<vmem>>, %arg7: memref<64x128xf32, #tpu.memory_space<vmem>>, %arg8: memref<1x128xf32, #tpu.memory_space<vmem>>, %arg9: memref<64x128xf32, #tpu.memory_space<vmem>>) attributes {dimension_semantics = [], scalar_prefetch = 0 : i64, scratch_operands = 0 : i64, tpu.core_type = #tpu.core_type<tc>} {
    %c0 = arith.constant 0 : index
    %c0_0 = arith.constant 0 : index
    %0 = vector.load %arg0[%c0, %c0_0] : memref<8x32xf32, #tpu.memory_space<vmem>>, vector<8x32xf32>
    %c0_1 = arith.constant 0 : index
    %c0_2 = arith.constant 0 : index
    %1 = vector.load %arg1[%c0_1, %c0_2] : memref<32x128xf32, #tpu.memory_space<vmem>>, vector<32x128xf32>
    %cst = arith.constant dense<0.000000e+00> : vector<8x128xf32>
    %2 = tpu.matmul %0, %1, %cst {dimension_numbers = #tpu.dot_dimension_numbers<[1], [0], [0], [1], [0, 0, 1, 1], [], []>} : vector<8x32xf32>, vector<32x128xf32>, vector<8x128xf32> -> vector<8x128xf32>
    %c0_3 = arith.constant 0 : index
    %c0_4 = arith.constant 0 : index
    %3 = vector.load %arg3[%c0_3, %c0_4] : memref<1x128xf32, #tpu.memory_space<vmem>>, vector<1x128xf32>
    %4 = vector.broadcast %3 : vector<1x128xf32> to vector<8x128xf32>
    %5 = arith.addf %2, %4 : vector<8x128xf32>
    %cst_5 = arith.constant 0.000000e+00 : f32
    %6 = vector.broadcast %cst_5 : f32 to vector<8x32xf32>
    %cst_6 = arith.constant 0.000000e+00 : f32
    %7 = vector.broadcast %cst_6 : f32 to vector<8x32xf32>
    %c0_7 = arith.constant 0 : index
    %c0_8 = arith.constant 0 : index
    %8 = vector.load %arg2[%c0_7, %c0_8] : memref<32x128xf32, #tpu.memory_space<vmem>>, vector<32x128xf32>
    %cst_9 = arith.constant dense<0.000000e+00> : vector<8x128xf32>
    %9 = tpu.matmul %6, %8, %cst_9 {dimension_numbers = #tpu.dot_dimension_numbers<[1], [0], [0], [1], [0, 0, 1, 1], [], []>} : vector<8x32xf32>, vector<32x128xf32>, vector<8x128xf32> -> vector<8x128xf32>
    %10 = arith.addf %5, %9 : vector<8x128xf32>
    %11 = vector.extract_strided_slice %10 {offsets = [0, 0], sizes = [8, 96], strides = [1, 1]} : vector<8x128xf32> to vector<8x96xf32>
    %12 = arith.negf %11 : vector<8x96xf32>
    %13 = math.exp %12 : vector<8x96xf32>
    %cst_10 = arith.constant 1.000000e+00 : f32
    %14 = vector.broadcast %cst_10 : f32 to vector<8x96xf32>
    %15 = arith.addf %14, %13 : vector<8x96xf32>
    %16 = arith.divf %14, %15 : vector<8x96xf32>
    %17 = vector.extract_strided_slice %10 {offsets = [0, 96], sizes = [8, 32], strides = [1, 1]} : vector<8x128xf32> to vector<8x32xf32>
    %18 = math.tanh %17 : vector<8x32xf32>
    %19 = vector.extract_strided_slice %16 {offsets = [0, 0], sizes = [8, 32], strides = [1, 1]} : vector<8x96xf32> to vector<8x32xf32>
    %20 = vector.extract_strided_slice %16 {offsets = [0, 32], sizes = [8, 32], strides = [1, 1]} : vector<8x96xf32> to vector<8x32xf32>
    %21 = vector.extract_strided_slice %16 {offsets = [0, 64], sizes = [8, 32], strides = [1, 1]} : vector<8x96xf32> to vector<8x32xf32>
    %22 = arith.mulf %20, %7 : vector<8x32xf32>
    %23 = arith.mulf %19, %18 : vector<8x32xf32>
    %24 = arith.addf %22, %23 : vector<8x32xf32>
    %25 = math.tanh %24 : vector<8x32xf32>
    %26 = arith.mulf %21, %25 : vector<8x32xf32>
    %c0_11 = arith.constant 0 : index
    %c0_12 = arith.constant 0 : index
    %27 = vector.load %arg2[%c0_11, %c0_12] : memref<32x128xf32, #tpu.memory_space<vmem>>, vector<32x128xf32>
    %cst_13 = arith.constant dense<0.000000e+00> : vector<8x128xf32>
    %28 = tpu.matmul %26, %27, %cst_13 {dimension_numbers = #tpu.dot_dimension_numbers<[1], [0], [0], [1], [0, 0, 1, 1], [], []>} : vector<8x32xf32>, vector<32x128xf32>, vector<8x128xf32> -> vector<8x128xf32>
    %29 = arith.addf %5, %28 : vector<8x128xf32>
    %30 = vector.extract_strided_slice %29 {offsets = [0, 0], sizes = [8, 96], strides = [1, 1]} : vector<8x128xf32> to vector<8x96xf32>
    %31 = arith.negf %30 : vector<8x96xf32>
    %32 = math.exp %31 : vector<8x96xf32>
    %cst_14 = arith.constant 1.000000e+00 : f32
    %33 = vector.broadcast %cst_14 : f32 to vector<8x96xf32>
    %34 = arith.addf %33, %32 : vector<8x96xf32>
    %35 = arith.divf %33, %34 : vector<8x96xf32>
    %36 = vector.extract_strided_slice %29 {offsets = [0, 96], sizes = [8, 32], strides = [1, 1]} : vector<8x128xf32> to vector<8x32xf32>
    %37 = math.tanh %36 : vector<8x32xf32>
    %38 = vector.extract_strided_slice %35 {offsets = [0, 0], sizes = [8, 32], strides = [1, 1]} : vector<8x96xf32> to vector<8x32xf32>
    %39 = vector.extract_strided_slice %35 {offsets = [0, 32], sizes = [8, 32], strides = [1, 1]} : vector<8x96xf32> to vector<8x32xf32>
    %40 = vector.extract_strided_slice %35 {offsets = [0, 64], sizes = [8, 32], strides = [1, 1]} : vector<8x96xf32> to vector<8x32xf32>
    %41 = arith.mulf %39, %24 : vector<8x32xf32>
    %42 = arith.mulf %38, %37 : vector<8x32xf32>
    %43 = arith.addf %41, %42 : vector<8x32xf32>
    %44 = math.tanh %43 : vector<8x32xf32>
    %45 = arith.mulf %40, %44 : vector<8x32xf32>
    %c0_15 = arith.constant 0 : index
    %c0_16 = arith.constant 0 : index
    %46 = vector.load %arg2[%c0_15, %c0_16] : memref<32x128xf32, #tpu.memory_space<vmem>>, vector<32x128xf32>
    %cst_17 = arith.constant dense<0.000000e+00> : vector<8x128xf32>
    %47 = tpu.matmul %45, %46, %cst_17 {dimension_numbers = #tpu.dot_dimension_numbers<[1], [0], [0], [1], [0, 0, 1, 1], [], []>} : vector<8x32xf32>, vector<32x128xf32>, vector<8x128xf32> -> vector<8x128xf32>
    %48 = arith.addf %5, %47 : vector<8x128xf32>
    %49 = vector.extract_strided_slice %48 {offsets = [0, 0], sizes = [8, 96], strides = [1, 1]} : vector<8x128xf32> to vector<8x96xf32>
    %50 = arith.negf %49 : vector<8x96xf32>
    %51 = math.exp %50 : vector<8x96xf32>
    %cst_18 = arith.constant 1.000000e+00 : f32
    %52 = vector.broadcast %cst_18 : f32 to vector<8x96xf32>
    %53 = arith.addf %52, %51 : vector<8x96xf32>
    %54 = arith.divf %52, %53 : vector<8x96xf32>
    %55 = vector.extract_strided_slice %48 {offsets = [0, 96], sizes = [8, 32], strides = [1, 1]} : vector<8x128xf32> to vector<8x32xf32>
    %56 = math.tanh %55 : vector<8x32xf32>
    %57 = vector.extract_strided_slice %54 {offsets = [0, 0], sizes = [8, 32], strides = [1, 1]} : vector<8x96xf32> to vector<8x32xf32>
    %58 = vector.extract_strided_slice %54 {offsets = [0, 32], sizes = [8, 32], strides = [1, 1]} : vector<8x96xf32> to vector<8x32xf32>
    %59 = vector.extract_strided_slice %54 {offsets = [0, 64], sizes = [8, 32], strides = [1, 1]} : vector<8x96xf32> to vector<8x32xf32>
    %60 = arith.mulf %58, %43 : vector<8x32xf32>
    %61 = arith.mulf %57, %56 : vector<8x32xf32>
    %62 = arith.addf %60, %61 : vector<8x32xf32>
    %63 = math.tanh %62 : vector<8x32xf32>
    %64 = arith.mulf %59, %63 : vector<8x32xf32>
    %c0_19 = arith.constant 0 : index
    %c0_20 = arith.constant 0 : index
    %65 = vector.load %arg2[%c0_19, %c0_20] : memref<32x128xf32, #tpu.memory_space<vmem>>, vector<32x128xf32>
    %cst_21 = arith.constant dense<0.000000e+00> : vector<8x128xf32>
    %66 = tpu.matmul %64, %65, %cst_21 {dimension_numbers = #tpu.dot_dimension_numbers<[1], [0], [0], [1], [0, 0, 1, 1], [], []>} : vector<8x32xf32>, vector<32x128xf32>, vector<8x128xf32> -> vector<8x128xf32>
    %67 = arith.addf %5, %66 : vector<8x128xf32>
    %68 = vector.extract_strided_slice %67 {offsets = [0, 0], sizes = [8, 96], strides = [1, 1]} : vector<8x128xf32> to vector<8x96xf32>
    %69 = arith.negf %68 : vector<8x96xf32>
    %70 = math.exp %69 : vector<8x96xf32>
    %cst_22 = arith.constant 1.000000e+00 : f32
    %71 = vector.broadcast %cst_22 : f32 to vector<8x96xf32>
    %72 = arith.addf %71, %70 : vector<8x96xf32>
    %73 = arith.divf %71, %72 : vector<8x96xf32>
    %74 = vector.extract_strided_slice %67 {offsets = [0, 96], sizes = [8, 32], strides = [1, 1]} : vector<8x128xf32> to vector<8x32xf32>
    %75 = math.tanh %74 : vector<8x32xf32>
    %76 = vector.extract_strided_slice %73 {offsets = [0, 0], sizes = [8, 32], strides = [1, 1]} : vector<8x96xf32> to vector<8x32xf32>
    %77 = vector.extract_strided_slice %73 {offsets = [0, 32], sizes = [8, 32], strides = [1, 1]} : vector<8x96xf32> to vector<8x32xf32>
    %78 = vector.extract_strided_slice %73 {offsets = [0, 64], sizes = [8, 32], strides = [1, 1]} : vector<8x96xf32> to vector<8x32xf32>
    %79 = arith.mulf %77, %62 : vector<8x32xf32>
    %80 = arith.mulf %76, %75 : vector<8x32xf32>
    %81 = arith.addf %79, %80 : vector<8x32xf32>
    %82 = math.tanh %81 : vector<8x32xf32>
    %83 = arith.mulf %78, %82 : vector<8x32xf32>
    %c0_23 = arith.constant 0 : index
    %c0_24 = arith.constant 0 : index
    %84 = vector.load %arg2[%c0_23, %c0_24] : memref<32x128xf32, #tpu.memory_space<vmem>>, vector<32x128xf32>
    %cst_25 = arith.constant dense<0.000000e+00> : vector<8x128xf32>
    %85 = tpu.matmul %83, %84, %cst_25 {dimension_numbers = #tpu.dot_dimension_numbers<[1], [0], [0], [1], [0, 0, 1, 1], [], []>} : vector<8x32xf32>, vector<32x128xf32>, vector<8x128xf32> -> vector<8x128xf32>
    %86 = arith.addf %5, %85 : vector<8x128xf32>
    %87 = vector.extract_strided_slice %86 {offsets = [0, 0], sizes = [8, 96], strides = [1, 1]} : vector<8x128xf32> to vector<8x96xf32>
    %88 = arith.negf %87 : vector<8x96xf32>
    %89 = math.exp %88 : vector<8x96xf32>
    %cst_26 = arith.constant 1.000000e+00 : f32
    %90 = vector.broadcast %cst_26 : f32 to vector<8x96xf32>
    %91 = arith.addf %90, %89 : vector<8x96xf32>
    %92 = arith.divf %90, %91 : vector<8x96xf32>
    %93 = vector.extract_strided_slice %86 {offsets = [0, 96], sizes = [8, 32], strides = [1, 1]} : vector<8x128xf32> to vector<8x32xf32>
    %94 = math.tanh %93 : vector<8x32xf32>
    %95 = vector.extract_strided_slice %92 {offsets = [0, 0], sizes = [8, 32], strides = [1, 1]} : vector<8x96xf32> to vector<8x32xf32>
    %96 = vector.extract_strided_slice %92 {offsets = [0, 32], sizes = [8, 32], strides = [1, 1]} : vector<8x96xf32> to vector<8x32xf32>
    %97 = vector.extract_strided_slice %92 {offsets = [0, 64], sizes = [8, 32], strides = [1, 1]} : vector<8x96xf32> to vector<8x32xf32>
    %98 = arith.mulf %96, %81 : vector<8x32xf32>
    %99 = arith.mulf %95, %94 : vector<8x32xf32>
    %100 = arith.addf %98, %99 : vector<8x32xf32>
    %101 = math.tanh %100 : vector<8x32xf32>
    %102 = arith.mulf %97, %101 : vector<8x32xf32>
    %c0_27 = arith.constant 0 : index
    %c0_28 = arith.constant 0 : index
    %103 = vector.load %arg2[%c0_27, %c0_28] : memref<32x128xf32, #tpu.memory_space<vmem>>, vector<32x128xf32>
    %cst_29 = arith.constant dense<0.000000e+00> : vector<8x128xf32>
    %104 = tpu.matmul %102, %103, %cst_29 {dimension_numbers = #tpu.dot_dimension_numbers<[1], [0], [0], [1], [0, 0, 1, 1], [], []>} : vector<8x32xf32>, vector<32x128xf32>, vector<8x128xf32> -> vector<8x128xf32>
    %105 = arith.addf %5, %104 : vector<8x128xf32>
    %106 = vector.extract_strided_slice %105 {offsets = [0, 0], sizes = [8, 96], strides = [1, 1]} : vector<8x128xf32> to vector<8x96xf32>
    %107 = arith.negf %106 : vector<8x96xf32>
    %108 = math.exp %107 : vector<8x96xf32>
    %cst_30 = arith.constant 1.000000e+00 : f32
    %109 = vector.broadcast %cst_30 : f32 to vector<8x96xf32>
    %110 = arith.addf %109, %108 : vector<8x96xf32>
    %111 = arith.divf %109, %110 : vector<8x96xf32>
    %112 = vector.extract_strided_slice %105 {offsets = [0, 96], sizes = [8, 32], strides = [1, 1]} : vector<8x128xf32> to vector<8x32xf32>
    %113 = math.tanh %112 : vector<8x32xf32>
    %114 = vector.extract_strided_slice %111 {offsets = [0, 0], sizes = [8, 32], strides = [1, 1]} : vector<8x96xf32> to vector<8x32xf32>
    %115 = vector.extract_strided_slice %111 {offsets = [0, 32], sizes = [8, 32], strides = [1, 1]} : vector<8x96xf32> to vector<8x32xf32>
    %116 = vector.extract_strided_slice %111 {offsets = [0, 64], sizes = [8, 32], strides = [1, 1]} : vector<8x96xf32> to vector<8x32xf32>
    %117 = arith.mulf %115, %100 : vector<8x32xf32>
    %118 = arith.mulf %114, %113 : vector<8x32xf32>
    %119 = arith.addf %117, %118 : vector<8x32xf32>
    %120 = math.tanh %119 : vector<8x32xf32>
    %121 = arith.mulf %116, %120 : vector<8x32xf32>
    %c0_31 = arith.constant 0 : index
    %c0_32 = arith.constant 0 : index
    %122 = vector.load %arg2[%c0_31, %c0_32] : memref<32x128xf32, #tpu.memory_space<vmem>>, vector<32x128xf32>
    %cst_33 = arith.constant dense<0.000000e+00> : vector<8x128xf32>
    %123 = tpu.matmul %121, %122, %cst_33 {dimension_numbers = #tpu.dot_dimension_numbers<[1], [0], [0], [1], [0, 0, 1, 1], [], []>} : vector<8x32xf32>, vector<32x128xf32>, vector<8x128xf32> -> vector<8x128xf32>
    %124 = arith.addf %5, %123 : vector<8x128xf32>
    %125 = vector.extract_strided_slice %124 {offsets = [0, 0], sizes = [8, 96], strides = [1, 1]} : vector<8x128xf32> to vector<8x96xf32>
    %126 = arith.negf %125 : vector<8x96xf32>
    %127 = math.exp %126 : vector<8x96xf32>
    %cst_34 = arith.constant 1.000000e+00 : f32
    %128 = vector.broadcast %cst_34 : f32 to vector<8x96xf32>
    %129 = arith.addf %128, %127 : vector<8x96xf32>
    %130 = arith.divf %128, %129 : vector<8x96xf32>
    %131 = vector.extract_strided_slice %124 {offsets = [0, 96], sizes = [8, 32], strides = [1, 1]} : vector<8x128xf32> to vector<8x32xf32>
    %132 = math.tanh %131 : vector<8x32xf32>
    %133 = vector.extract_strided_slice %130 {offsets = [0, 0], sizes = [8, 32], strides = [1, 1]} : vector<8x96xf32> to vector<8x32xf32>
    %134 = vector.extract_strided_slice %130 {offsets = [0, 32], sizes = [8, 32], strides = [1, 1]} : vector<8x96xf32> to vector<8x32xf32>
    %135 = vector.extract_strided_slice %130 {offsets = [0, 64], sizes = [8, 32], strides = [1, 1]} : vector<8x96xf32> to vector<8x32xf32>
    %136 = arith.mulf %134, %119 : vector<8x32xf32>
    %137 = arith.mulf %133, %132 : vector<8x32xf32>
    %138 = arith.addf %136, %137 : vector<8x32xf32>
    %139 = math.tanh %138 : vector<8x32xf32>
    %140 = arith.mulf %135, %139 : vector<8x32xf32>
    %c0_35 = arith.constant 0 : index
    %c0_36 = arith.constant 0 : index
    %141 = vector.load %arg2[%c0_35, %c0_36] : memref<32x128xf32, #tpu.memory_space<vmem>>, vector<32x128xf32>
    %cst_37 = arith.constant dense<0.000000e+00> : vector<8x128xf32>
    %142 = tpu.matmul %140, %141, %cst_37 {dimension_numbers = #tpu.dot_dimension_numbers<[1], [0], [0], [1], [0, 0, 1, 1], [], []>} : vector<8x32xf32>, vector<32x128xf32>, vector<8x128xf32> -> vector<8x128xf32>
    %143 = arith.addf %5, %142 : vector<8x128xf32>
    %144 = vector.extract_strided_slice %143 {offsets = [0, 0], sizes = [8, 96], strides = [1, 1]} : vector<8x128xf32> to vector<8x96xf32>
    %145 = arith.negf %144 : vector<8x96xf32>
    %146 = math.exp %145 : vector<8x96xf32>
    %cst_38 = arith.constant 1.000000e+00 : f32
    %147 = vector.broadcast %cst_38 : f32 to vector<8x96xf32>
    %148 = arith.addf %147, %146 : vector<8x96xf32>
    %149 = arith.divf %147, %148 : vector<8x96xf32>
    %150 = vector.extract_strided_slice %143 {offsets = [0, 96], sizes = [8, 32], strides = [1, 1]} : vector<8x128xf32> to vector<8x32xf32>
    %151 = math.tanh %150 : vector<8x32xf32>
    %152 = vector.extract_strided_slice %149 {offsets = [0, 0], sizes = [8, 32], strides = [1, 1]} : vector<8x96xf32> to vector<8x32xf32>
    %153 = vector.extract_strided_slice %149 {offsets = [0, 32], sizes = [8, 32], strides = [1, 1]} : vector<8x96xf32> to vector<8x32xf32>
    %154 = vector.extract_strided_slice %149 {offsets = [0, 64], sizes = [8, 32], strides = [1, 1]} : vector<8x96xf32> to vector<8x32xf32>
    %155 = arith.mulf %153, %138 : vector<8x32xf32>
    %156 = arith.mulf %152, %151 : vector<8x32xf32>
    %157 = arith.addf %155, %156 : vector<8x32xf32>
    %158 = math.tanh %157 : vector<8x32xf32>
    %159 = arith.mulf %154, %158 : vector<8x32xf32>
    %160 = tpu.concatenate %26, %45, %64, %83, %102, %121, %140, %159 in 0 : vector<8x32xf32>, vector<8x32xf32>, vector<8x32xf32>, vector<8x32xf32>, vector<8x32xf32>, vector<8x32xf32>, vector<8x32xf32>, vector<8x32xf32> -> vector<64x32xf32>
    %c0_39 = arith.constant 0 : index
    %c0_40 = arith.constant 0 : index
    %161 = vector.load %arg4[%c0_39, %c0_40] : memref<32x256xf32, #tpu.memory_space<vmem>>, vector<32x256xf32>
    %cst_41 = arith.constant dense<0.000000e+00> : vector<64x256xf32>
    %162 = tpu.matmul %160, %161, %cst_41 {dimension_numbers = #tpu.dot_dimension_numbers<[1], [0], [0], [1], [0, 0, 1, 1], [], []>} : vector<64x32xf32>, vector<32x256xf32>, vector<64x256xf32> -> vector<64x256xf32>
    %c0_42 = arith.constant 0 : index
    %c0_43 = arith.constant 0 : index
    %163 = vector.load %arg6[%c0_42, %c0_43] : memref<1x256xf32, #tpu.memory_space<vmem>>, vector<1x256xf32>
    %164 = vector.broadcast %163 : vector<1x256xf32> to vector<64x256xf32>
    %165 = arith.addf %162, %164 : vector<64x256xf32>
    %cst_44 = arith.constant 0.000000e+00 : f32
    %166 = vector.broadcast %cst_44 : f32 to vector<8x64xf32>
    %cst_45 = arith.constant 0.000000e+00 : f32
    %167 = vector.broadcast %cst_45 : f32 to vector<8x64xf32>
    %c0_46 = arith.constant 0 : index
    %c0_47 = arith.constant 0 : index
    %168 = vector.load %arg5[%c0_46, %c0_47] : memref<64x256xf32, #tpu.memory_space<vmem>>, vector<64x256xf32>
    %cst_48 = arith.constant dense<0.000000e+00> : vector<8x256xf32>
    %169 = tpu.matmul %166, %168, %cst_48 {dimension_numbers = #tpu.dot_dimension_numbers<[1], [0], [0], [1], [0, 0, 1, 1], [], []>} : vector<8x64xf32>, vector<64x256xf32>, vector<8x256xf32> -> vector<8x256xf32>
    %170 = vector.extract_strided_slice %165 {offsets = [0, 0], sizes = [8, 256], strides = [1, 1]} : vector<64x256xf32> to vector<8x256xf32>
    %171 = arith.addf %170, %169 : vector<8x256xf32>
    %172 = vector.extract_strided_slice %171 {offsets = [0, 0], sizes = [8, 192], strides = [1, 1]} : vector<8x256xf32> to vector<8x192xf32>
    %173 = arith.negf %172 : vector<8x192xf32>
    %174 = math.exp %173 : vector<8x192xf32>
    %cst_49 = arith.constant 1.000000e+00 : f32
    %175 = vector.broadcast %cst_49 : f32 to vector<8x192xf32>
    %176 = arith.addf %175, %174 : vector<8x192xf32>
    %177 = arith.divf %175, %176 : vector<8x192xf32>
    %178 = vector.extract_strided_slice %171 {offsets = [0, 192], sizes = [8, 64], strides = [1, 1]} : vector<8x256xf32> to vector<8x64xf32>
    %179 = math.tanh %178 : vector<8x64xf32>
    %180 = vector.extract_strided_slice %177 {offsets = [0, 0], sizes = [8, 64], strides = [1, 1]} : vector<8x192xf32> to vector<8x64xf32>
    %181 = vector.extract_strided_slice %177 {offsets = [0, 64], sizes = [8, 64], strides = [1, 1]} : vector<8x192xf32> to vector<8x64xf32>
    %182 = vector.extract_strided_slice %177 {offsets = [0, 128], sizes = [8, 64], strides = [1, 1]} : vector<8x192xf32> to vector<8x64xf32>
    %183 = arith.mulf %181, %167 : vector<8x64xf32>
    %184 = arith.mulf %180, %179 : vector<8x64xf32>
    %185 = arith.addf %183, %184 : vector<8x64xf32>
    %186 = math.tanh %185 : vector<8x64xf32>
    %187 = arith.mulf %182, %186 : vector<8x64xf32>
    %c0_50 = arith.constant 0 : index
    %c0_51 = arith.constant 0 : index
    %188 = vector.load %arg5[%c0_50, %c0_51] : memref<64x256xf32, #tpu.memory_space<vmem>>, vector<64x256xf32>
    %cst_52 = arith.constant dense<0.000000e+00> : vector<8x256xf32>
    %189 = tpu.matmul %187, %188, %cst_52 {dimension_numbers = #tpu.dot_dimension_numbers<[1], [0], [0], [1], [0, 0, 1, 1], [], []>} : vector<8x64xf32>, vector<64x256xf32>, vector<8x256xf32> -> vector<8x256xf32>
    %190 = vector.extract_strided_slice %165 {offsets = [8, 0], sizes = [8, 256], strides = [1, 1]} : vector<64x256xf32> to vector<8x256xf32>
    %191 = arith.addf %190, %189 : vector<8x256xf32>
    %192 = vector.extract_strided_slice %191 {offsets = [0, 0], sizes = [8, 192], strides = [1, 1]} : vector<8x256xf32> to vector<8x192xf32>
    %193 = arith.negf %192 : vector<8x192xf32>
    %194 = math.exp %193 : vector<8x192xf32>
    %cst_53 = arith.constant 1.000000e+00 : f32
    %195 = vector.broadcast %cst_53 : f32 to vector<8x192xf32>
    %196 = arith.addf %195, %194 : vector<8x192xf32>
    %197 = arith.divf %195, %196 : vector<8x192xf32>
    %198 = vector.extract_strided_slice %191 {offsets = [0, 192], sizes = [8, 64], strides = [1, 1]} : vector<8x256xf32> to vector<8x64xf32>
    %199 = math.tanh %198 : vector<8x64xf32>
    %200 = vector.extract_strided_slice %197 {offsets = [0, 0], sizes = [8, 64], strides = [1, 1]} : vector<8x192xf32> to vector<8x64xf32>
    %201 = vector.extract_strided_slice %197 {offsets = [0, 64], sizes = [8, 64], strides = [1, 1]} : vector<8x192xf32> to vector<8x64xf32>
    %202 = vector.extract_strided_slice %197 {offsets = [0, 128], sizes = [8, 64], strides = [1, 1]} : vector<8x192xf32> to vector<8x64xf32>
    %203 = arith.mulf %201, %185 : vector<8x64xf32>
    %204 = arith.mulf %200, %199 : vector<8x64xf32>
    %205 = arith.addf %203, %204 : vector<8x64xf32>
    %206 = math.tanh %205 : vector<8x64xf32>
    %207 = arith.mulf %202, %206 : vector<8x64xf32>
    %c0_54 = arith.constant 0 : index
    %c0_55 = arith.constant 0 : index
    %208 = vector.load %arg5[%c0_54, %c0_55] : memref<64x256xf32, #tpu.memory_space<vmem>>, vector<64x256xf32>
    %cst_56 = arith.constant dense<0.000000e+00> : vector<8x256xf32>
    %209 = tpu.matmul %207, %208, %cst_56 {dimension_numbers = #tpu.dot_dimension_numbers<[1], [0], [0], [1], [0, 0, 1, 1], [], []>} : vector<8x64xf32>, vector<64x256xf32>, vector<8x256xf32> -> vector<8x256xf32>
    %210 = vector.extract_strided_slice %165 {offsets = [16, 0], sizes = [8, 256], strides = [1, 1]} : vector<64x256xf32> to vector<8x256xf32>
    %211 = arith.addf %210, %209 : vector<8x256xf32>
    %212 = vector.extract_strided_slice %211 {offsets = [0, 0], sizes = [8, 192], strides = [1, 1]} : vector<8x256xf32> to vector<8x192xf32>
    %213 = arith.negf %212 : vector<8x192xf32>
    %214 = math.exp %213 : vector<8x192xf32>
    %cst_57 = arith.constant 1.000000e+00 : f32
    %215 = vector.broadcast %cst_57 : f32 to vector<8x192xf32>
    %216 = arith.addf %215, %214 : vector<8x192xf32>
    %217 = arith.divf %215, %216 : vector<8x192xf32>
    %218 = vector.extract_strided_slice %211 {offsets = [0, 192], sizes = [8, 64], strides = [1, 1]} : vector<8x256xf32> to vector<8x64xf32>
    %219 = math.tanh %218 : vector<8x64xf32>
    %220 = vector.extract_strided_slice %217 {offsets = [0, 0], sizes = [8, 64], strides = [1, 1]} : vector<8x192xf32> to vector<8x64xf32>
    %221 = vector.extract_strided_slice %217 {offsets = [0, 64], sizes = [8, 64], strides = [1, 1]} : vector<8x192xf32> to vector<8x64xf32>
    %222 = vector.extract_strided_slice %217 {offsets = [0, 128], sizes = [8, 64], strides = [1, 1]} : vector<8x192xf32> to vector<8x64xf32>
    %223 = arith.mulf %221, %205 : vector<8x64xf32>
    %224 = arith.mulf %220, %219 : vector<8x64xf32>
    %225 = arith.addf %223, %224 : vector<8x64xf32>
    %226 = math.tanh %225 : vector<8x64xf32>
    %227 = arith.mulf %222, %226 : vector<8x64xf32>
    %c0_58 = arith.constant 0 : index
    %c0_59 = arith.constant 0 : index
    %228 = vector.load %arg5[%c0_58, %c0_59] : memref<64x256xf32, #tpu.memory_space<vmem>>, vector<64x256xf32>
    %cst_60 = arith.constant dense<0.000000e+00> : vector<8x256xf32>
    %229 = tpu.matmul %227, %228, %cst_60 {dimension_numbers = #tpu.dot_dimension_numbers<[1], [0], [0], [1], [0, 0, 1, 1], [], []>} : vector<8x64xf32>, vector<64x256xf32>, vector<8x256xf32> -> vector<8x256xf32>
    %230 = vector.extract_strided_slice %165 {offsets = [24, 0], sizes = [8, 256], strides = [1, 1]} : vector<64x256xf32> to vector<8x256xf32>
    %231 = arith.addf %230, %229 : vector<8x256xf32>
    %232 = vector.extract_strided_slice %231 {offsets = [0, 0], sizes = [8, 192], strides = [1, 1]} : vector<8x256xf32> to vector<8x192xf32>
    %233 = arith.negf %232 : vector<8x192xf32>
    %234 = math.exp %233 : vector<8x192xf32>
    %cst_61 = arith.constant 1.000000e+00 : f32
    %235 = vector.broadcast %cst_61 : f32 to vector<8x192xf32>
    %236 = arith.addf %235, %234 : vector<8x192xf32>
    %237 = arith.divf %235, %236 : vector<8x192xf32>
    %238 = vector.extract_strided_slice %231 {offsets = [0, 192], sizes = [8, 64], strides = [1, 1]} : vector<8x256xf32> to vector<8x64xf32>
    %239 = math.tanh %238 : vector<8x64xf32>
    %240 = vector.extract_strided_slice %237 {offsets = [0, 0], sizes = [8, 64], strides = [1, 1]} : vector<8x192xf32> to vector<8x64xf32>
    %241 = vector.extract_strided_slice %237 {offsets = [0, 64], sizes = [8, 64], strides = [1, 1]} : vector<8x192xf32> to vector<8x64xf32>
    %242 = vector.extract_strided_slice %237 {offsets = [0, 128], sizes = [8, 64], strides = [1, 1]} : vector<8x192xf32> to vector<8x64xf32>
    %243 = arith.mulf %241, %225 : vector<8x64xf32>
    %244 = arith.mulf %240, %239 : vector<8x64xf32>
    %245 = arith.addf %243, %244 : vector<8x64xf32>
    %246 = math.tanh %245 : vector<8x64xf32>
    %247 = arith.mulf %242, %246 : vector<8x64xf32>
    %c0_62 = arith.constant 0 : index
    %c0_63 = arith.constant 0 : index
    %248 = vector.load %arg5[%c0_62, %c0_63] : memref<64x256xf32, #tpu.memory_space<vmem>>, vector<64x256xf32>
    %cst_64 = arith.constant dense<0.000000e+00> : vector<8x256xf32>
    %249 = tpu.matmul %247, %248, %cst_64 {dimension_numbers = #tpu.dot_dimension_numbers<[1], [0], [0], [1], [0, 0, 1, 1], [], []>} : vector<8x64xf32>, vector<64x256xf32>, vector<8x256xf32> -> vector<8x256xf32>
    %250 = vector.extract_strided_slice %165 {offsets = [32, 0], sizes = [8, 256], strides = [1, 1]} : vector<64x256xf32> to vector<8x256xf32>
    %251 = arith.addf %250, %249 : vector<8x256xf32>
    %252 = vector.extract_strided_slice %251 {offsets = [0, 0], sizes = [8, 192], strides = [1, 1]} : vector<8x256xf32> to vector<8x192xf32>
    %253 = arith.negf %252 : vector<8x192xf32>
    %254 = math.exp %253 : vector<8x192xf32>
    %cst_65 = arith.constant 1.000000e+00 : f32
    %255 = vector.broadcast %cst_65 : f32 to vector<8x192xf32>
    %256 = arith.addf %255, %254 : vector<8x192xf32>
    %257 = arith.divf %255, %256 : vector<8x192xf32>
    %258 = vector.extract_strided_slice %251 {offsets = [0, 192], sizes = [8, 64], strides = [1, 1]} : vector<8x256xf32> to vector<8x64xf32>
    %259 = math.tanh %258 : vector<8x64xf32>
    %260 = vector.extract_strided_slice %257 {offsets = [0, 0], sizes = [8, 64], strides = [1, 1]} : vector<8x192xf32> to vector<8x64xf32>
    %261 = vector.extract_strided_slice %257 {offsets = [0, 64], sizes = [8, 64], strides = [1, 1]} : vector<8x192xf32> to vector<8x64xf32>
    %262 = vector.extract_strided_slice %257 {offsets = [0, 128], sizes = [8, 64], strides = [1, 1]} : vector<8x192xf32> to vector<8x64xf32>
    %263 = arith.mulf %261, %245 : vector<8x64xf32>
    %264 = arith.mulf %260, %259 : vector<8x64xf32>
    %265 = arith.addf %263, %264 : vector<8x64xf32>
    %266 = math.tanh %265 : vector<8x64xf32>
    %267 = arith.mulf %262, %266 : vector<8x64xf32>
    %c0_66 = arith.constant 0 : index
    %c0_67 = arith.constant 0 : index
    %268 = vector.load %arg5[%c0_66, %c0_67] : memref<64x256xf32, #tpu.memory_space<vmem>>, vector<64x256xf32>
    %cst_68 = arith.constant dense<0.000000e+00> : vector<8x256xf32>
    %269 = tpu.matmul %267, %268, %cst_68 {dimension_numbers = #tpu.dot_dimension_numbers<[1], [0], [0], [1], [0, 0, 1, 1], [], []>} : vector<8x64xf32>, vector<64x256xf32>, vector<8x256xf32> -> vector<8x256xf32>
    %270 = vector.extract_strided_slice %165 {offsets = [40, 0], sizes = [8, 256], strides = [1, 1]} : vector<64x256xf32> to vector<8x256xf32>
    %271 = arith.addf %270, %269 : vector<8x256xf32>
    %272 = vector.extract_strided_slice %271 {offsets = [0, 0], sizes = [8, 192], strides = [1, 1]} : vector<8x256xf32> to vector<8x192xf32>
    %273 = arith.negf %272 : vector<8x192xf32>
    %274 = math.exp %273 : vector<8x192xf32>
    %cst_69 = arith.constant 1.000000e+00 : f32
    %275 = vector.broadcast %cst_69 : f32 to vector<8x192xf32>
    %276 = arith.addf %275, %274 : vector<8x192xf32>
    %277 = arith.divf %275, %276 : vector<8x192xf32>
    %278 = vector.extract_strided_slice %271 {offsets = [0, 192], sizes = [8, 64], strides = [1, 1]} : vector<8x256xf32> to vector<8x64xf32>
    %279 = math.tanh %278 : vector<8x64xf32>
    %280 = vector.extract_strided_slice %277 {offsets = [0, 0], sizes = [8, 64], strides = [1, 1]} : vector<8x192xf32> to vector<8x64xf32>
    %281 = vector.extract_strided_slice %277 {offsets = [0, 64], sizes = [8, 64], strides = [1, 1]} : vector<8x192xf32> to vector<8x64xf32>
    %282 = vector.extract_strided_slice %277 {offsets = [0, 128], sizes = [8, 64], strides = [1, 1]} : vector<8x192xf32> to vector<8x64xf32>
    %283 = arith.mulf %281, %265 : vector<8x64xf32>
    %284 = arith.mulf %280, %279 : vector<8x64xf32>
    %285 = arith.addf %283, %284 : vector<8x64xf32>
    %286 = math.tanh %285 : vector<8x64xf32>
    %287 = arith.mulf %282, %286 : vector<8x64xf32>
    %c0_70 = arith.constant 0 : index
    %c0_71 = arith.constant 0 : index
    %288 = vector.load %arg5[%c0_70, %c0_71] : memref<64x256xf32, #tpu.memory_space<vmem>>, vector<64x256xf32>
    %cst_72 = arith.constant dense<0.000000e+00> : vector<8x256xf32>
    %289 = tpu.matmul %287, %288, %cst_72 {dimension_numbers = #tpu.dot_dimension_numbers<[1], [0], [0], [1], [0, 0, 1, 1], [], []>} : vector<8x64xf32>, vector<64x256xf32>, vector<8x256xf32> -> vector<8x256xf32>
    %290 = vector.extract_strided_slice %165 {offsets = [48, 0], sizes = [8, 256], strides = [1, 1]} : vector<64x256xf32> to vector<8x256xf32>
    %291 = arith.addf %290, %289 : vector<8x256xf32>
    %292 = vector.extract_strided_slice %291 {offsets = [0, 0], sizes = [8, 192], strides = [1, 1]} : vector<8x256xf32> to vector<8x192xf32>
    %293 = arith.negf %292 : vector<8x192xf32>
    %294 = math.exp %293 : vector<8x192xf32>
    %cst_73 = arith.constant 1.000000e+00 : f32
    %295 = vector.broadcast %cst_73 : f32 to vector<8x192xf32>
    %296 = arith.addf %295, %294 : vector<8x192xf32>
    %297 = arith.divf %295, %296 : vector<8x192xf32>
    %298 = vector.extract_strided_slice %291 {offsets = [0, 192], sizes = [8, 64], strides = [1, 1]} : vector<8x256xf32> to vector<8x64xf32>
    %299 = math.tanh %298 : vector<8x64xf32>
    %300 = vector.extract_strided_slice %297 {offsets = [0, 0], sizes = [8, 64], strides = [1, 1]} : vector<8x192xf32> to vector<8x64xf32>
    %301 = vector.extract_strided_slice %297 {offsets = [0, 64], sizes = [8, 64], strides = [1, 1]} : vector<8x192xf32> to vector<8x64xf32>
    %302 = vector.extract_strided_slice %297 {offsets = [0, 128], sizes = [8, 64], strides = [1, 1]} : vector<8x192xf32> to vector<8x64xf32>
    %303 = arith.mulf %301, %285 : vector<8x64xf32>
    %304 = arith.mulf %300, %299 : vector<8x64xf32>
    %305 = arith.addf %303, %304 : vector<8x64xf32>
    %306 = math.tanh %305 : vector<8x64xf32>
    %307 = arith.mulf %302, %306 : vector<8x64xf32>
    %c0_74 = arith.constant 0 : index
    %c0_75 = arith.constant 0 : index
    %308 = vector.load %arg5[%c0_74, %c0_75] : memref<64x256xf32, #tpu.memory_space<vmem>>, vector<64x256xf32>
    %cst_76 = arith.constant dense<0.000000e+00> : vector<8x256xf32>
    %309 = tpu.matmul %307, %308, %cst_76 {dimension_numbers = #tpu.dot_dimension_numbers<[1], [0], [0], [1], [0, 0, 1, 1], [], []>} : vector<8x64xf32>, vector<64x256xf32>, vector<8x256xf32> -> vector<8x256xf32>
    %310 = vector.extract_strided_slice %165 {offsets = [56, 0], sizes = [8, 256], strides = [1, 1]} : vector<64x256xf32> to vector<8x256xf32>
    %311 = arith.addf %310, %309 : vector<8x256xf32>
    %312 = vector.extract_strided_slice %311 {offsets = [0, 0], sizes = [8, 192], strides = [1, 1]} : vector<8x256xf32> to vector<8x192xf32>
    %313 = arith.negf %312 : vector<8x192xf32>
    %314 = math.exp %313 : vector<8x192xf32>
    %cst_77 = arith.constant 1.000000e+00 : f32
    %315 = vector.broadcast %cst_77 : f32 to vector<8x192xf32>
    %316 = arith.addf %315, %314 : vector<8x192xf32>
    %317 = arith.divf %315, %316 : vector<8x192xf32>
    %318 = vector.extract_strided_slice %311 {offsets = [0, 192], sizes = [8, 64], strides = [1, 1]} : vector<8x256xf32> to vector<8x64xf32>
    %319 = math.tanh %318 : vector<8x64xf32>
    %320 = vector.extract_strided_slice %317 {offsets = [0, 0], sizes = [8, 64], strides = [1, 1]} : vector<8x192xf32> to vector<8x64xf32>
    %321 = vector.extract_strided_slice %317 {offsets = [0, 64], sizes = [8, 64], strides = [1, 1]} : vector<8x192xf32> to vector<8x64xf32>
    %322 = vector.extract_strided_slice %317 {offsets = [0, 128], sizes = [8, 64], strides = [1, 1]} : vector<8x192xf32> to vector<8x64xf32>
    %323 = arith.mulf %321, %305 : vector<8x64xf32>
    %324 = arith.mulf %320, %319 : vector<8x64xf32>
    %325 = arith.addf %323, %324 : vector<8x64xf32>
    %326 = math.tanh %325 : vector<8x64xf32>
    %327 = arith.mulf %322, %326 : vector<8x64xf32>
    %328 = tpu.concatenate %187, %207, %227, %247, %267, %287, %307, %327 in 0 : vector<8x64xf32>, vector<8x64xf32>, vector<8x64xf32>, vector<8x64xf32>, vector<8x64xf32>, vector<8x64xf32>, vector<8x64xf32>, vector<8x64xf32> -> vector<64x64xf32>
    %c0_78 = arith.constant 0 : index
    %c0_79 = arith.constant 0 : index
    %329 = vector.load %arg7[%c0_78, %c0_79] : memref<64x128xf32, #tpu.memory_space<vmem>>, vector<64x128xf32>
    %cst_80 = arith.constant dense<0.000000e+00> : vector<64x128xf32>
    %330 = tpu.matmul %328, %329, %cst_80 {dimension_numbers = #tpu.dot_dimension_numbers<[1], [0], [0], [1], [0, 0, 1, 1], [], []>} : vector<64x64xf32>, vector<64x128xf32>, vector<64x128xf32> -> vector<64x128xf32>
    %c0_81 = arith.constant 0 : index
    %c0_82 = arith.constant 0 : index
    %331 = vector.load %arg8[%c0_81, %c0_82] : memref<1x128xf32, #tpu.memory_space<vmem>>, vector<1x128xf32>
    %332 = vector.broadcast %331 : vector<1x128xf32> to vector<64x128xf32>
    %333 = arith.addf %330, %332 : vector<64x128xf32>
    %c0_83 = arith.constant 0 : index
    %c0_84 = arith.constant 0 : index
    %334 = vector.load %arg9[%c0_83, %c0_84] : memref<64x128xf32, #tpu.memory_space<vmem>>, vector<64x128xf32>
    tpu.vector_store %arg9[%c0_83, %c0_84], %333 {strides = array<i32>} : memref<64x128xf32, #tpu.memory_space<vmem>>, vector<64x128xf32>,
    return
  }
}

</mosaic_0001>

<bundles_post_ra>
// kernel: tpu_custom_call.1
= control target key start
LH: loop header
LB: loop body
LE: loop exit
PB: predicated region body
PF: predicated region fallthrough
CT: control target
= control target key end

     0   :  { %14 = vsyncpa [#allocation3], 0  ;;  %s3517_s0 = inlined_call_operand.hbm [shape: f32[8,32], index: 0, kind: input, shape index: {}]   ;;  %s3518_s1 = inlined_call_operand.hbm [shape: f32[32,128], index: 1, kind: input, shape index: {}]   ;;  %s3519_s2 = inlined_call_operand.hbm [shape: f32[32,128], index: 2, kind: input, shape index: {}]   ;;  %s3520_s3 = inlined_call_operand.vmem [shape: f32[1,128], index: 3, kind: input, shape index: {}]   ;;  %s3521_s4 = inlined_call_operand.hbm [shape: f32[32,256], index: 4, kind: input, shape index: {}]   ;;  %s3522_s5 = inlined_call_operand.hbm [shape: f32[64,256], index: 5, kind: input, shape index: {}]   ;;  %s3523_s6 = inlined_call_operand.vmem [shape: f32[1,256], index: 6, kind: input, shape index: {}]   ;;  %s3524_s7 = inlined_call_operand.hbm [shape: f32[64,128], index: 7, kind: input, shape index: {}]   ;;  %s3525_s8 = inlined_call_operand.vmem [shape: f32[1,128], index: 8, kind: input, shape index: {}]   ;;  %s3526_s9 = inlined_call_operand.hbm [shape: f32[64,128], index: 9, kind: output, shape index: {}]  }
   0x1   :  { %15 = vsyncpa [#allocation6], 0 }
   0x2   :  { %16 = vsyncpa [#allocation9], 0 }
   0x3   :  { %17 = vsyncpa [#allocation12], 0 }
   0x4   :  { %18 = vsyncpa [#allocation4], 0  ;;  %s2977_s30 = smov [#allocation5]   ;;  %s2813_s13 = scalar_lea.hbm %s3518_s1, 512 }
   0x5   :  { %s34_s10 = sshll.u32 %s2977_s30, 4  ;;  %p2814_p0 = scmp.ne.s32.totalorder %s3518_s1, %s2813_s13  ;;  %s35_s10 = int_to_ptr.vmem [resolvable:$true] %s34_s10 }
   0x6   :  { %p2817_p1 = scmp.lt.u32.totalorder %s2813_s13, %s3518_s1 }
   0x8   :  { %p2819_p2 = pnand %p2817_p1, %p2814_p0 }
   0xa   :  { %2822 = shalt.err (!%p2819_p2)
}
   0xb   :  { %s2823_s18 = scalar_lea.vmem %s35_s10, 512  ;;  %p2828_p4 = scmp.lt.s32.totalorder %s35_s10, %s35_s10 }
   0xc   :  { %p2824_p3 = scmp.ne.s32.totalorder %s35_s10, %s2823_s18  ;;  %p2829_p5 = scmp.lt.s32.totalorder %s2823_s18, %s2823_s18 }
   0xe   :  { %p2830_p6 = por %p2829_p5, %p2828_p4 }
  0x10   :  { %p2831_p7 = pnand %p2830_p6, %p2824_p3 }
  0x12   :  { %2834 = shalt.err (!%p2831_p7)
}
  0x13   :  { %s2978_s19 = smov 128   ;;  %s2979_s20 = smov 8  }
  0x14   :  { %40 = dma.hbm_to_vmem [thread:$0]  %s3518_s1, 512, %s35_s10, [#allocation6], %s2978_s19, %s2978_s19, %s2979_s20  }
  0x15   :  { %s2980_s23 = smov [#allocation8]   ;;  %s2835_s27 = scalar_lea.hbm %s3521_s4, 1024 }
  0x16   :  { %s60_s24 = sshll.u32 %s2980_s23, 4  ;;  %p2836_p8 = scmp.ne.s32.totalorder %s3521_s4, %s2835_s27  ;;  %s61_s24 = int_to_ptr.vmem [resolvable:$true] %s60_s24 }
  0x17   :  { %p2839_p9 = scmp.lt.u32.totalorder %s2835_s27, %s3521_s4 }
  0x19   :  { %p2841_p10 = pnand %p2839_p9, %p2836_p8 }
  0x1b   :  { %2844 = shalt.err (!%p2841_p10)
}
  0x1c   :  { %s2845_s12 = scalar_lea.vmem %s61_s24, 1024  ;;  %p2850_p12 = scmp.lt.s32.totalorder %s61_s24, %s61_s24 }
  0x1d   :  { %p2846_p11 = scmp.ne.s32.totalorder %s61_s24, %s2845_s12  ;;  %p2851_p13 = scmp.lt.s32.totalorder %s2845_s12, %s2845_s12 }
  0x1f   :  { %p2852_p0 = por %p2851_p13, %p2850_p12 }
  0x21   :  { %p2853_p1 = pnand %p2852_p0, %p2846_p11 }
  0x23   :  { %2856 = shalt.err (!%p2853_p1)
}
  0x24   :  { %s2981_s1 = smov 256   ;;  %s2982_s10 = smov 16  }
  0x25   :  { %66 = dma.hbm_to_vmem [thread:$0]  %s3521_s4, 1024, %s61_s24, [#allocation9], %s2981_s1, %s2981_s1, %s2982_s10  }
  0x26   :  { %s2983_s15 = smov [#allocation2]   ;;  %s2984_s17 = smov [#allocation7]  }
  0x27   :  { %s25_s16 = sshll.u32 %s2983_s15, 4  ;;  %s46_s18 = sshll.u32 %s2984_s17, 4  ;;  %s26_s16 = int_to_ptr.vmem [resolvable:$true] %s25_s16  ;;  %s3073_s18 = int_to_ptr.vmem [resolvable:$true] %s46_s18 }
  0x28   :  { %s2857_s23 = scalar_lea.hbm %s3517_s0, 128 }
  0x29   :  { %p2858_p2 = scmp.ne.s32.totalorder %s3517_s0, %s2857_s23  ;;  %p2861_p3 = scmp.lt.u32.totalorder %s2857_s23, %s3517_s0 }
  0x2b   :  { %p2863_p4 = pnand %p2861_p3, %p2858_p2 }
  0x2d   :  { %2866 = shalt.err (!%p2863_p4)
}
  0x2e   :  { %s2867_s4 = scalar_lea.vmem %s26_s16, 128  ;;  %p2872_p6 = scmp.lt.s32.totalorder %s26_s16, %s26_s16 }
  0x2f   :  { %p2868_p5 = scmp.ne.s32.totalorder %s26_s16, %s2867_s4  ;;  %p2873_p7 = scmp.lt.s32.totalorder %s2867_s4, %s2867_s4 }
  0x31   :  { %p2874_p8 = por %p2873_p7, %p2872_p6 }
  0x33   :  { %p2875_p9 = pnand %p2874_p8, %p2868_p5 }
  0x35   :  { %2878 = shalt.err (!%p2875_p9)
}
  0x36   :  { %28 = dma.hbm_to_vmem [thread:$0]  %s3517_s0, 128, %s26_s16, [#allocation3]  }
  0x37   :  { %s2879_s12 = scalar_lea.hbm %s3519_s2, 512 }
  0x38   :  { %p2880_p10 = scmp.ne.s32.totalorder %s3519_s2, %s2879_s12  ;;  %p2883_p11 = scmp.lt.u32.totalorder %s2879_s12, %s3519_s2 }
  0x3a   :  { %p2885_p12 = pnand %p2883_p11, %p2880_p10 }
  0x3c   :  { %2888 = shalt.err (!%p2885_p12)
}
  0x3d   :  { %s2889_s21 = scalar_lea.vmem %s3073_s18, 512  ;;  %p2894_p0 = scmp.lt.s32.totalorder %s3073_s18, %s3073_s18 }
  0x3e   :  { %p2890_p13 = scmp.ne.s32.totalorder %s3073_s18, %s2889_s21  ;;  %p2895_p1 = scmp.lt.s32.totalorder %s2889_s21, %s2889_s21 }
  0x40   :  { %p2896_p2 = por %p2895_p1, %p2894_p0 }
  0x42   :  { %p2897_p3 = pnand %p2896_p2, %p2890_p13 }
  0x44   :  { %2900 = shalt.err (!%p2897_p3)
}
  0x45   :  { %52 = dma.hbm_to_vmem [thread:$0]  %s3519_s2, 512, %s3073_s18, [#allocation6], %s2978_s19, %s2978_s19, %s2979_s20  }
  0x46   :  { %s2985_s22 = smov [#allocation10]   ;;  %s2986_s25 = smov [#allocation11]  }
  0x47   :  { %s72_s23 = sshll.u32 %s2985_s22, 4  ;;  %s86_s26 = sshll.u32 %s2986_s25, 4  ;;  %s73_s23 = int_to_ptr.vmem [resolvable:$true] %s72_s23  ;;  %s3107_s26 = int_to_ptr.vmem [resolvable:$true] %s86_s26 }
  0x48   :  { %s2901_s4 = scalar_lea.hbm %s3522_s5, 2048 }
  0x49   :  { %p2902_p4 = scmp.ne.s32.totalorder %s3522_s5, %s2901_s4  ;;  %p2905_p5 = scmp.lt.u32.totalorder %s2901_s4, %s3522_s5 }
  0x4b   :  { %p2907_p6 = pnand %p2905_p5, %p2902_p4 }
  0x4d   :  { %2910 = shalt.err (!%p2907_p6)
}
  0x4e   :  { %s2911_s2 = scalar_lea.vmem %s73_s23, 2048  ;;  %p2916_p8 = scmp.lt.s32.totalorder %s73_s23, %s73_s23 }
  0x4f   :  { %p2912_p7 = scmp.ne.s32.totalorder %s73_s23, %s2911_s2  ;;  %p2917_p9 = scmp.lt.s32.totalorder %s2911_s2, %s2911_s2 }
  0x51   :  { %p2918_p10 = por %p2917_p9, %p2916_p8 }
  0x53   :  { %p2919_p11 = pnand %p2918_p10, %p2912_p7 }
  0x55   :  { %2922 = shalt.err (!%p2919_p11)
}
  0x56   :  { %78 = dma.hbm_to_vmem [thread:$0]  %s3522_s5, 2048, %s73_s23, [#allocation9], %s2981_s1, %s2981_s1, %s2982_s10  }
  0x57   :  { %s2923_s15 = scalar_lea.hbm %s3524_s7, 1024 }
  0x58   :  { %p2924_p12 = scmp.ne.s32.totalorder %s3524_s7, %s2923_s15  ;;  %p2927_p13 = scmp.lt.u32.totalorder %s2923_s15, %s3524_s7 }
  0x5a   :  { %p2929_p0 = pnand %p2927_p13, %p2924_p12 }
  0x5c   :  { %2932 = shalt.err (!%p2929_p0)
}
  0x5d   :  { %s2933_s22 = scalar_lea.vmem %s3107_s26, 1024  ;;  %p2938_p2 = scmp.lt.s32.totalorder %s3107_s26, %s3107_s26 }
  0x5e   :  { %p2934_p1 = scmp.ne.s32.totalorder %s3107_s26, %s2933_s22  ;;  %p2939_p3 = scmp.lt.s32.totalorder %s2933_s22, %s2933_s22 }
  0x60   :  { %p2940_p4 = por %p2939_p3, %p2938_p2 }
  0x62   :  { %p2941_p5 = pnand %p2940_p4, %p2934_p1 }
  0x64   :  { %2944 = shalt.err (!%p2941_p5)
}
  0x65   :  { %92 = dma.hbm_to_vmem [thread:$0]  %s3524_s7, 1024, %s3107_s26, [#allocation12], %s2978_s19, %s2978_s19, %s2979_s20  }
  0x66   :  { %2967 = dma.done.wait [#allocation3], 128  }
  0x67   :  { %2968 = vsyncadd [#allocation3], 4294967168 }
  0x68   :  { %2969 = dma.done.wait [#allocation6], 1024  }
  0x69   :  { %2970 = vsyncadd [#allocation6], 4294966272 }
  0x6a   :  { %2971 = dma.done.wait [#allocation9], 3072  }
  0x6b   :  { %2972 = vsyncadd [#allocation9], 4294964224 }
  0x6c   :  { %2973 = dma.done.wait [#allocation12], 1024  }
  0x6d   :  { %2974 = vsyncadd [#allocation12], 4294966272  ;;  %v2987_v0 = vmov 0.0|0.0   ;;  %vm2988_vm0 = vmmov 0   ;;  %v2989_v1 = vmov 0.0   ;;  %v114_v2 = vld [vmem:[#allocation5] sm:$0xff] }
  0x6e   :  { %2399 = vmatprep.subr.bf16.mxu0 %v2987_v0  ;;  %2405 = vmatprep.subr.bf16.mxu1 %v2987_v0  ;;  %v115_v3 = vld [vmem:[#allocation5 + $0x8] sm:$0xff]  ;;  %v199_v4 = vld [vmem:[#allocation7] sm:$0xff]  ;;  %v116_v7 = vld [vmem:[#allocation5 + $0x10] sm:$0xff]  ;;  %vm125_vm1 = vcmask 261120   ;;  %s2990_s23 = smov 32   ;;  %vm1155_vm2 = vcmask 523264  }
  0x6f   :  { %2280 = vmatprep.mubr.msk.f32.mxu0 %vm2988_vm0, %v2989_v1  ;;  %2291 = vmatprep.mubr.msk.f32.mxu1 %vm2988_vm0, %v2989_v1  ;;  %v2400_v5 = vpack.c.bf16 %v115_v3, %v114_v2  ;;  %v200_v6 = vld [vmem:[#allocation7 + $0x8] sm:$0xff]  ;;  %v117_v8 = vld [vmem:[#allocation5 + $0x18] sm:$0xff]  ;;  %v201_v10 = vld [vmem:[#allocation7 + $0x10] sm:$0xff] }
  0x70   :  { %v3150_v9 = vpack.c.bf16 %v200_v6, %v199_v4  ;;  %v202_v11 = vld [vmem:[#allocation7 + $0x18] sm:$0xff]  ;;  %v2403_v12 = vpack.c.bf16 %v117_v8, %v116_v7 }
  0x71   :  { %2401 = vmatpush3.bf16.msra.mxu0 %v2400_v5  ;;  %v3154_v13 = vpack.c.bf16 %v202_v11, %v201_v10  ;;  %v113_v14 = vld [vmem:[#allocation2] sm:$0xff] }
  0x72   :  { %2407 = vmatpush3.bf16.msra.mxu1 %v3150_v9  ;;  %2402 = vmatprep.subr.bf16.mxu0 %v2987_v0  ;;  %v2154_v15 = vld [vmem:[%s3520_s3] ss:$0 sm:$0xff]  ;;  %s2991_s3 = smov 64  }
  0x73   :  { %2408 = vmatprep.subr.bf16.mxu1 %v2987_v0 }
  0x75   :  { %2404 = vmatpush3.bf16.msra.mxu0 %v2403_v12 }
  0x76   :  { %2410 = vmatpush3.bf16.msra.mxu1 %v3154_v13  ;;  %2411 = vmatprep.subr.bf16.mxu0 %v2987_v0 }
  0x77   :  { %2417 = vmatprep.subr.bf16.mxu1 %v2987_v0 }
  0x78   :  { %2281 = vmatmul.mubr.msk.f32.vlgmr.msra.gmra.mrb[0].mxu0 %vm125_vm1, %v113_v14 }
  0x79   :  { %2292 = vmatmul.mubr.f32.vlgmr.msra.gmra.mrb[0].mxu1 %v2989_v1  ;;  %2413 = vmatpush3.bf16.msra.mxu0 %v3150_v9 }
  0x7a   :  { %2414 = vmatprep.subr.bf16.mxu0 %v2987_v0  ;;  %2302 = vmatprep.mubr.msk.f32.mxu0 %vm2988_vm0, %v2989_v1 }
  0x7b   :  { %2419 = vmatpush3.bf16.msra.mxu1 %v3150_v9  ;;  %2313 = vmatprep.mubr.msk.f32.mxu1 %vm2988_vm0, %v2989_v1 }
  0x7c   :  { %2420 = vmatprep.subr.bf16.mxu1 %v2987_v0 }
  0x7d   :  { %2416 = vmatpush3.bf16.msra.mxu0 %v3154_v13 }
  0x7e   :  { %2423 = vmatprep.subr.bf16.mxu0 %v2987_v0 }
  0x7f   :  { %2422 = vmatpush3.bf16.msra.mxu1 %v3154_v13 }
  0x80   :  { %2429 = vmatprep.subr.bf16.mxu1 %v2987_v0 }
 0x14b   :  { %v195_v16 = vpop.f32.mrb[0].mxu0 }
 0x14c   :  { %v3177_v17 = vadd.f32 %v2154_v15, %v195_v16  ;;  %v2282_v18 = vpop.f32.mrb[1].mxu0  ;;  %v272_v19 = vpop.f32.mrb[0].mxu1 }
 0x14d   :  { %v2293_v20 = vpop.f32.mrb[1].mxu1 }
 0x14e   :  { %v276_v21 = vadd.f32 %v272_v19, %v3177_v17 }
 0x150   :  { %2653 = vtanh.f32 %v276_v21  ;;  %v2156_v23 = vmul.f32 -1.442695, %v276_v21 }
 0x152   :  { %2655 = vpow2.f32 %v2156_v23 }
 0x15a   :  { %v2654_v22 = vpop.eup %2653 }
 0x15b   :  { %286 = vrot.lane.b32.xlu0 %v2654_v22, %s2990_s23 }
 0x15c   :  { %v2656_v24 = vpop.eup %2655 }
 0x15d   :  { %v280_v25 = vadd.f32 1.0, %v2656_v24 }
 0x15f   :  { %2657 = vrcp.f32 %v280_v25 }
 0x169   :  { %v2658_v26 = vpop.eup %2657 }
 0x16a   :  { %v284_v29 = vmul.f32 0.0, %v2658_v26 }
 0x1cd   :  { %v287_v27 = vpop.permute.xlu0 %286 }
 0x1ce   :  { %v289_v28 = vmul.f32 %v2658_v26, %v287_v27 }
 0x1d0   :  { %291 = vrot.lane.b32.xlu0 %v289_v28, %s2990_s23 }
 0x242   :  { %v292_v30 = vpop.permute.xlu0 %291 }
 0x243   :  { %v294_v31 = vadd.f32 %v292_v30, %v284_v29 }
 0x245   :  { %2659 = vtanh.f32 %v294_v31 }
 0x24f   :  { %v2660_v32 = vpop.eup %2659 }
 0x250   :  { %297 = vrot.lane.b32.xlu1 %v2660_v32, %s2990_s23 }
 0x2c2   :  { %v298_v33 = vpop.permute.xlu1 %297 }
 0x2c3   :  { %v300_v34 = vmul.f32 %v2658_v26, %v298_v33 }
 0x2c5   :  { %302 = vrot.lane.b32.xlu1 %v300_v34, %s2991_s3 }
 0x337   :  { %v3184_v35 = vpop.permute.xlu1 %302 }
 0x338   :  { %2303 = vmatmul.mubr.msk.f32.vlgmr.msra.gmra.mrb[2].mxu0 %vm125_vm1, %v3184_v35 }
 0x339   :  { %2425 = vmatpush3.bf16.msra.mxu0 %v3150_v9  ;;  %2324 = vmatprep.mubr.msk.f32.mxu0 %vm2988_vm0, %v2989_v1 }
 0x33a   :  { %2426 = vmatprep.subr.bf16.mxu0 %v2987_v0 }
 0x33d   :  { %2428 = vmatpush3.bf16.msra.mxu0 %v3154_v13 }
 0x33e   :  { %2435 = vmatprep.subr.bf16.mxu0 %v2987_v0 }
 0x40b   :  { %v372_v36 = vpop.f32.mrb[2].mxu0 }
 0x40c   :  { %v376_v37 = vadd.f32 %v372_v36, %v3177_v17  ;;  %v2304_v38 = vpop.f32.mrb[3].mxu0 }
 0x40e   :  { %2661 = vtanh.f32 %v376_v37  ;;  %v2158_v40 = vmul.f32 -1.442695, %v376_v37 }
 0x410   :  { %2663 = vpow2.f32 %v2158_v40 }
 0x418   :  { %v2662_v39 = vpop.eup %2661 }
 0x419   :  { %386 = vrot.lane.b32.xlu0 %v2662_v39, %s2990_s23 }
 0x41a   :  { %v2664_v41 = vpop.eup %2663 }
 0x41b   :  { %v380_v42 = vadd.f32 1.0, %v2664_v41 }
 0x41d   :  { %2665 = vrcp.f32 %v380_v42 }
 0x427   :  { %v2666_v43 = vpop.eup %2665 }
 0x428   :  { %v384_v46 = vmul.f32 %v2666_v43, %v294_v31 }
 0x48b   :  { %v387_v44 = vpop.permute.xlu0 %386 }
 0x48c   :  { %v389_v45 = vmul.f32 %v2666_v43, %v387_v44 }
 0x48e   :  { %391 = vrot.lane.b32.xlu1 %v389_v45, %s2990_s23 }
 0x500   :  { %v392_v47 = vpop.permute.xlu1 %391 }
 0x501   :  { %v394_v48 = vadd.f32 %v392_v47, %v384_v46 }
 0x503   :  { %2667 = vtanh.f32 %v394_v48 }
 0x50d   :  { %v2668_v49 = vpop.eup %2667 }
 0x50e   :  { %397 = vrot.lane.b32.xlu0 %v2668_v49, %s2990_s23 }
 0x580   :  { %v398_v50 = vpop.permute.xlu0 %397 }
 0x581   :  { %v400_v51 = vmul.f32 %v2666_v43, %v398_v50 }
 0x583   :  { %402 = vrot.lane.b32.xlu1 %v400_v51, %s2991_s3 }
 0x5f5   :  { %v3199_v52 = vpop.permute.xlu1 %402 }
 0x5f6   :  { %2314 = vmatmul.mubr.msk.f32.vlgmr.msra.gmra.mrb[2].mxu1 %vm125_vm1, %v3199_v52 }
 0x5f7   :  { %2431 = vmatpush3.bf16.msra.mxu1 %v3150_v9  ;;  %2335 = vmatprep.mubr.msk.f32.mxu1 %vm2988_vm0, %v2989_v1 }
 0x5f8   :  { %2432 = vmatprep.subr.bf16.mxu1 %v2987_v0 }
 0x5fb   :  { %2434 = vmatpush3.bf16.msra.mxu1 %v3154_v13 }
 0x5fc   :  { %2441 = vmatprep.subr.bf16.mxu1 %v2987_v0 }
 0x6c9   :  { %v472_v53 = vpop.f32.mrb[2].mxu1 }
 0x6ca   :  { %v476_v54 = vadd.f32 %v472_v53, %v3177_v17  ;;  %v2315_v55 = vpop.f32.mrb[3].mxu1 }
 0x6cc   :  { %2669 = vtanh.f32 %v476_v54  ;;  %v2160_v57 = vmul.f32 -1.442695, %v476_v54 }
 0x6ce   :  { %2671 = vpow2.f32 %v2160_v57 }
 0x6d6   :  { %v2670_v56 = vpop.eup %2669 }
 0x6d7   :  { %486 = vrot.lane.b32.xlu0 %v2670_v56, %s2990_s23 }
 0x6d8   :  { %v2672_v58 = vpop.eup %2671 }
 0x6d9   :  { %v480_v59 = vadd.f32 1.0, %v2672_v58 }
 0x6db   :  { %2673 = vrcp.f32 %v480_v59 }
 0x6e5   :  { %v2674_v60 = vpop.eup %2673 }
 0x6e6   :  { %v484_v63 = vmul.f32 %v2674_v60, %v394_v48 }
 0x749   :  { %v487_v61 = vpop.permute.xlu0 %486 }
 0x74a   :  { %v489_v62 = vmul.f32 %v2674_v60, %v487_v61 }
 0x74c   :  { %491 = vrot.lane.b32.xlu1 %v489_v62, %s2990_s23 }
 0x7be   :  { %v492_v2 = vpop.permute.xlu1 %491 }
 0x7bf   :  { %v494_v3 = vadd.f32 %v492_v2, %v484_v63 }
 0x7c1   :  { %2675 = vtanh.f32 %v494_v3 }
 0x7cb   :  { %v2676_v4 = vpop.eup %2675 }
 0x7cc   :  { %497 = vrot.lane.b32.xlu0 %v2676_v4, %s2990_s23 }
 0x83e   :  { %v498_v5 = vpop.permute.xlu0 %497 }
 0x83f   :  { %v500_v6 = vmul.f32 %v2674_v60, %v498_v5 }
 0x841   :  { %502 = vrot.lane.b32.xlu1 %v500_v6, %s2991_s3 }
 0x8b3   :  { %v3214_v7 = vpop.permute.xlu1 %502 }
 0x8b4   :  { %2325 = vmatmul.mubr.msk.f32.vlgmr.msra.gmra.mrb[4].mxu0 %vm125_vm1, %v3214_v7 }
 0x8b5   :  { %2437 = vmatpush3.bf16.msra.mxu0 %v3150_v9  ;;  %2346 = vmatprep.mubr.msk.f32.mxu0 %vm2988_vm0, %v2989_v1 }
 0x8b6   :  { %2438 = vmatprep.subr.bf16.mxu0 %v2987_v0 }
 0x8b9   :  { %2440 = vmatpush3.bf16.msra.mxu0 %v3154_v13 }
 0x8ba   :  { %2447 = vmatprep.subr.bf16.mxu0 %v2987_v0 }
 0x987   :  { %v572_v8 = vpop.f32.mrb[4].mxu0 }
 0x988   :  { %v576_v10 = vadd.f32 %v572_v8, %v3177_v17  ;;  %v2326_v11 = vpop.f32.mrb[5].mxu0 }
 0x98a   :  { %2677 = vtanh.f32 %v576_v10  ;;  %v2162_v14 = vmul.f32 -1.442695, %v576_v10 }
 0x98c   :  { %2679 = vpow2.f32 %v2162_v14 }
 0x994   :  { %v2678_v12 = vpop.eup %2677 }
 0x995   :  { %586 = vrot.lane.b32.xlu0 %v2678_v12, %s2990_s23 }
 0x996   :  { %v2680_v15 = vpop.eup %2679 }
 0x997   :  { %v580_v16 = vadd.f32 1.0, %v2680_v15  ;;  %v1002_v15 = vld [vmem:[#allocation8 + $0x8] sm:$0xff] }
 0x999   :  { %2681 = vrcp.f32 %v580_v16  ;;  %v1004_v16 = vld [vmem:[#allocation8 + $0x18] sm:$0xff] }
 0x9a3   :  { %v2682_v18 = vpop.eup %2681 }
 0x9a4   :  { %v584_v21 = vmul.f32 %v2682_v18, %v494_v3 }
 0xa07   :  { %v587_v19 = vpop.permute.xlu0 %586 }
 0xa08   :  { %v589_v20 = vmul.f32 %v2682_v18, %v587_v19 }
 0xa0a   :  { %591 = vrot.lane.b32.xlu1 %v589_v20, %s2990_s23 }
 0xa7c   :  { %v592_v22 = vpop.permute.xlu1 %591 }
 0xa7d   :  { %v594_v23 = vadd.f32 %v592_v22, %v584_v21  ;;  %v1001_v22 = vld [vmem:[#allocation8] sm:$0xff] }
 0xa7f   :  { %2683 = vtanh.f32 %v594_v23 }
 0xa89   :  { %v2684_v24 = vpop.eup %2683 }
 0xa8a   :  { %597 = vrot.lane.b32.xlu0 %v2684_v24, %s2990_s23  ;;  %v1006_v24 = vld [vmem:[#allocation8 + $0x28] sm:$0xff] }
 0xafc   :  { %v598_v25 = vpop.permute.xlu0 %597 }
 0xafd   :  { %v600_v26 = vmul.f32 %v2682_v18, %v598_v25  ;;  %v2453_v18 = vpack.c.bf16 %v1004_v16, %v1002_v15  ;;  %v1008_v25 = vld [vmem:[#allocation8 + $0x38] sm:$0xff] }
 0xaff   :  { %602 = vrot.lane.b32.xlu1 %v600_v26, %s2991_s3 }
 0xb71   :  { %v3229_v27 = vpop.permute.xlu1 %602 }
 0xb72   :  { %2336 = vmatmul.mubr.msk.f32.vlgmr.msra.gmra.mrb[4].mxu1 %vm125_vm1, %v3229_v27 }
 0xb73   :  { %2443 = vmatpush3.bf16.msra.mxu1 %v3150_v9  ;;  %2357 = vmatprep.mubr.msk.f32.mxu1 %vm2988_vm0, %v2989_v1 }
 0xb74   :  { %2444 = vmatprep.subr.bf16.mxu1 %v2987_v0 }
 0xb77   :  { %2446 = vmatpush3.bf16.msra.mxu1 %v3154_v13 }
 0xc45   :  { %v672_v28 = vpop.f32.mrb[4].mxu1 }
 0xc46   :  { %v676_v29 = vadd.f32 %v672_v28, %v3177_v17  ;;  %v2337_v30 = vpop.f32.mrb[5].mxu1  ;;  %v2457_v28 = vpack.c.bf16 %v1008_v25, %v1006_v24 }
 0xc47   :  { %v1007_v30 = vld [vmem:[#allocation8 + $0x30] sm:$0xff] }
 0xc48   :  { %2685 = vtanh.f32 %v676_v29  ;;  %v2164_v32 = vmul.f32 -1.442695, %v676_v29  ;;  %v1005_v29 = vld [vmem:[#allocation8 + $0x20] sm:$0xff] }
 0xc4a   :  { %2687 = vpow2.f32 %v2164_v32  ;;  %v2459_v32 = vpack.c.bf16 %v1007_v30, %v1005_v29 }
 0xc52   :  { %v2686_v31 = vpop.eup %2685 }
 0xc53   :  { %686 = vrot.lane.b32.xlu0 %v2686_v31, %s2990_s23 }
 0xc54   :  { %v2688_v33 = vpop.eup %2687 }
 0xc55   :  { %v680_v34 = vadd.f32 1.0, %v2688_v33 }
 0xc57   :  { %2689 = vrcp.f32 %v680_v34 }
 0xc61   :  { %v2690_v36 = vpop.eup %2689 }
 0xc62   :  { %v684_v39 = vmul.f32 %v2690_v36, %v594_v23  ;;  %v1003_v23 = vld [vmem:[#allocation8 + $0x10] sm:$0xff] }
 0xc63   :  { %v2455_v26 = vpack.c.bf16 %v1003_v23, %v1001_v22 }
 0xcc5   :  { %v687_v37 = vpop.permute.xlu0 %686 }
 0xcc6   :  { %v689_v38 = vmul.f32 %v2690_v36, %v687_v37 }
 0xcc8   :  { %691 = vrot.lane.b32.xlu1 %v689_v38, %s2990_s23 }
 0xd3a   :  { %v692_v40 = vpop.permute.xlu1 %691 }
 0xd3b   :  { %v694_v41 = vadd.f32 %v692_v40, %v684_v39 }
 0xd3d   :  { %2691 = vtanh.f32 %v694_v41 }
 0xd47   :  { %v2692_v42 = vpop.eup %2691 }
 0xd48   :  { %697 = vrot.lane.b32.xlu0 %v2692_v42, %s2990_s23 }
 0xdba   :  { %v698_v43 = vpop.permute.xlu0 %697 }
 0xdbb   :  { %v700_v44 = vmul.f32 %v2690_v36, %v698_v43 }
 0xdbd   :  { %702 = vrot.lane.b32.xlu1 %v700_v44, %s2991_s3 }
 0xe2f   :  { %v3243_v45 = vpop.permute.xlu1 %702 }
 0xe30   :  { %2347 = vmatmul.mubr.msk.f32.vlgmr.msra.gmra.mrb[6].mxu0 %vm125_vm1, %v3243_v45 }
 0xe31   :  { %2449 = vmatpush3.bf16.msra.mxu0 %v3150_v9  ;;  %2368 = vmatprep.mubr.msk.f32.mxu0 %vm2988_vm0, %v2989_v1 }
 0xe32   :  { %2450 = vmatprep.subr.bf16.mxu0 %v2987_v0 }
 0xe35   :  { %2452 = vmatpush3.bf16.msra.mxu0 %v3154_v13 }
 0xe36   :  { %2454 = vmatprep.subr.bf16.mxu0 %v2453_v18  ;;  %v1151_v18 = vld [vmem:[#allocation10 + $0x60] sm:$0xff] }
 0xf03   :  { %v772_v46 = vpop.f32.mrb[6].mxu0 }
 0xf04   :  { %v776_v47 = vadd.f32 %v772_v46, %v3177_v17  ;;  %v2348_v48 = vpop.f32.mrb[7].mxu0 }
 0xf06   :  { %2693 = vtanh.f32 %v776_v47  ;;  %v2166_v50 = vmul.f32 -1.442695, %v776_v47 }
 0xf08   :  { %2695 = vpow2.f32 %v2166_v50 }
 0xf10   :  { %v2694_v49 = vpop.eup %2693 }
 0xf11   :  { %786 = vrot.lane.b32.xlu0 %v2694_v49, %s2990_s23 }
 0xf12   :  { %v2696_v51 = vpop.eup %2695 }
 0xf13   :  { %v780_v53 = vadd.f32 1.0, %v2696_v51 }
 0xf15   :  { %2697 = vrcp.f32 %v780_v53 }
 0xf1f   :  { %v2698_v9 = vpop.eup %2697 }
 0xf20   :  { %v784_v0 = vmul.f32 %v2698_v9, %v694_v41 }
 0xf83   :  { %v787_v54 = vpop.permute.xlu0 %786 }
 0xf84   :  { %v789_v55 = vmul.f32 %v2698_v9, %v787_v54 }
 0xf86   :  { %791 = vrot.lane.b32.xlu1 %v789_v55, %s2990_s23 }
 0xff8   :  { %v792_v13 = vpop.permute.xlu1 %791 }
 0xff9   :  { %v794_v56 = vadd.f32 %v792_v13, %v784_v0  ;;  %v1140_v13 = vld [vmem:[#allocation10 + $0x8] sm:$0xff] }
 0xffb   :  { %2699 = vtanh.f32 %v794_v56 }
0x1005   :  { %v2700_v57 = vpop.eup %2699 }
0x1006   :  { %797 = vrot.lane.b32.xlu0 %v2700_v57, %s2990_s23  ;;  %v1139_v57 = vld [vmem:[#allocation10] sm:$0xff] }
0x1078   :  { %v798_v58 = vpop.permute.xlu0 %797 }
0x1079   :  { %v800_v59 = vmul.f32 %v2698_v9, %v798_v58 }
0x107b   :  { %802 = vrot.lane.b32.xlu1 %v800_v59, %s2991_s3  ;;  %v1141_v59 = vld [vmem:[#allocation10 + $0x10] sm:$0xff] }
0x10ed   :  { %v803_v60 = vpop.permute.xlu1 %802 }
0x10ee   :  { %2358 = vmatmul.mubr.msk.f32.vlgmr.msra.gmra.mrb[6].mxu1 %vm125_vm1, %v803_v60 }
0x10ef   :  { %1434 = vmatprep.mubr.f32.mxu1 %v2989_v1 }
0x11c1   :  { %v872_v61 = vpop.f32.mrb[6].mxu1 }
0x11c2   :  { %v876_v62 = vadd.f32 %v872_v61, %v3177_v17  ;;  %v2359_v63 = vpop.f32.mrb[7].mxu1  ;;  %v1146_v61 = vld [vmem:[#allocation10 + $0x38] sm:$0xff] }
0x11c4   :  { %2701 = vtanh.f32 %v876_v62  ;;  %v2168_v3 = vmul.f32 -1.442695, %v876_v62  ;;  %v3325_v62 = vpack.c.bf16 %v1141_v59, %v1139_v57 }
0x11c6   :  { %2703 = vpow2.f32 %v2168_v3  ;;  %v1145_v3 = vld [vmem:[#allocation10 + $0x30] sm:$0xff] }
0x11ce   :  { %v2702_v2 = vpop.eup %2701 }
0x11cf   :  { %886 = vrot.lane.b32.xlu0 %v2702_v2, %s2990_s23  ;;  %v1143_v2 = vld [vmem:[#allocation10 + $0x20] sm:$0xff] }
0x11d0   :  { %v2704_v4 = vpop.eup %2703 }
0x11d1   :  { %v880_v5 = vadd.f32 1.0, %v2704_v4  ;;  %v1148_v4 = vld [vmem:[#allocation10 + $0x48] sm:$0xff] }
0x11d3   :  { %2705 = vrcp.f32 %v880_v5  ;;  %v1150_v5 = vld [vmem:[#allocation10 + $0x58] sm:$0xff] }
0x11dd   :  { %v2706_v6 = vpop.eup %2705 }
0x11de   :  { %v884_v11 = vmul.f32 %v2706_v6, %v794_v56  ;;  %v1142_v56 = vld [vmem:[#allocation10 + $0x18] sm:$0xff] }
0x11df   :  { %v3323_v58 = vpack.c.bf16 %v1142_v56, %v1140_v13 }
0x11e1   :  { %2494 = vmatprep.subr.bf16.mxu1 %v3323_v58 }
0x11e2   :  { %2496 = vmatpush1.bf16.msra.mxu1 %v3325_v62 }
0x1241   :  { %v887_v8 = vpop.permute.xlu0 %886 }
0x1242   :  { %v889_v10 = vmul.f32 %v2706_v6, %v887_v8  ;;  %v3336_v8 = vpack.c.bf16 %v1150_v5, %v1148_v4 }
0x1244   :  { %891 = vrot.lane.b32.xlu1 %v889_v10, %s2990_s23  ;;  %v1147_v10 = vld [vmem:[#allocation10 + $0x40] sm:$0xff] }
0x12b6   :  { %v892_v12 = vpop.permute.xlu1 %891 }
0x12b7   :  { %v3262_v14 = vadd.f32 %v892_v12, %v884_v11  ;;  %v1149_v11 = vld [vmem:[#allocation10 + $0x50] sm:$0xff]  ;;  %v1152_v12 = vld [vmem:[#allocation10 + $0x68] sm:$0xff] }
0x12b8   :  { %v3340_v15 = vpack.c.bf16 %v1149_v11, %v1147_v10 }
0x12b9   :  { %2707 = vtanh.f32 %v3262_v14 }
0x12c3   :  { %v2708_v19 = vpop.eup %2707 }
0x12c4   :  { %897 = vrot.lane.b32.xlu0 %v2708_v19, %s2990_s23  ;;  %v1153_v19 = vld [vmem:[#allocation10 + $0x70] sm:$0xff] }
0x1336   :  { %v898_v20 = vpop.permute.xlu0 %897 }
0x1337   :  { %v900_v21 = vmul.f32 %v2706_v6, %v898_v20  ;;  %v3332_v6 = vpack.c.bf16 %v1145_v3, %v1143_v2 }
0x1339   :  { %902 = vrot.lane.b32.xlu1 %v900_v21, %s2991_s3  ;;  %v3349_v21 = vpack.c.bf16 %v1153_v19, %v1151_v18  ;;  %v2005_v18 = vld [vmem:[#allocation11 + $0x10] sm:$0xff] }
0x13ab   :  { %v903_v31 = vpop.permute.xlu1 %902 }
0x13ac   :  { %2369 = vmatmul.mubr.msk.f32.vlgmr.msra.gmra.mrb[8].mxu0 %vm125_vm1, %v903_v31 }
0x13ad   :  { %2456 = vmatpush1.bf16.msra.mxu0 %v2455_v26  ;;  %1090 = vmatprep.mubr.f32.mxu0 %v2989_v1 }
0x13ae   :  { %2458 = vmatprep.subr.bf16.mxu0 %v2457_v28 }
0x13b1   :  { %2460 = vmatpush1.bf16.msra.mxu0 %v2459_v32 }
0x13b2   :  { %2462 = vmatprep.subr.bf16.mxu0 %v3323_v58 }
0x13b4   :  { %2171 = vmatmul.mubr.msk.f32.vlgmr.msra.gmra.mrb[10].mxu0 %vm125_vm1, %v3184_v35  ;;  %v1011_v35 = vlaneseq }
0x13b5   :  { %1096 = vmatprep.mubr.f32.mxu0 %v2989_v1  ;;  %2464 = vmatpush1.bf16.msra.mxu0 %v3325_v62 }
0x13b8   :  { %2172 = vmatmul.mubr.msk.f32.gmra.mrb[12].mxu0 %vm125_vm1, %v3199_v52  ;;  %v3288_v52 = vshrl.u32 %v1011_v35, 7 }
0x13b9   :  { %1102 = vmatprep.mubr.f32.mxu0 %v2989_v1 }
0x13ba   :  { %v1017_v25 = vsub.s32 1, %v3288_v52 }
0x13bc   :  { %2173 = vmatmul.mubr.msk.f32.gmra.mrb[14].mxu0 %vm125_vm1, %v3214_v7  ;;  %v1013_v7 = vsub.s32 0, %v3288_v52 }
0x13bd   :  { %1108 = vmatprep.mubr.f32.mxu0 %v2989_v1 }
0x13c0   :  { %2174 = vmatmul.mubr.msk.f32.gmra.mrb[16].mxu0 %vm125_vm1, %v3229_v27  ;;  %v3294_v27 = vld [vmem:[%s3523_s6] sm:$0x3] }
0x13c1   :  { %1114 = vmatprep.mubr.f32.mxu0 %v2989_v1  ;;  %v3297_v33 = vrot.slane %v3294_v27, %v1013_v7  ;;  %v3376_v29 = vrot.slane %v3294_v27, %v1017_v25 }
0x13c4   :  { %2175 = vmatmul.mubr.msk.f32.gmra.mrb[18].mxu0 %vm125_vm1, %v3243_v45 }
0x13c5   :  { %1120 = vmatprep.mubr.f32.mxu0 %v2989_v1 }
0x13c8   :  { %2176 = vmatmul.mubr.msk.f32.gmra.mrb[20].mxu0 %vm125_vm1, %v803_v60  ;;  %v1144_v60 = vld [vmem:[#allocation10 + $0x28] sm:$0xff] }
0x13c9   :  { %1126 = vmatprep.mubr.f32.mxu0 %v2989_v1  ;;  %v3327_v63 = vpack.c.bf16 %v1146_v61, %v1144_v60 }
0x13cb   :  { %2466 = vmatprep.subr.bf16.mxu0 %v3327_v63  ;;  %2498 = vmatprep.subr.bf16.mxu1 %v3327_v63 }
0x13cc   :  { %2177 = vmatmul.mubr.msk.f32.gmra.mrb[22].mxu0 %vm125_vm1, %v903_v31  ;;  %2500 = vmatpush1.bf16.msra.mxu1 %v3332_v6 }
0x13cd   :  { %1132 = vmatprep.mubr.f32.mxu0 %v2989_v1  ;;  %2468 = vmatpush1.bf16.msra.mxu0 %v3332_v6 }
0x13ce   :  { %2470 = vmatprep.subr.bf16.mxu0 %v3336_v8  ;;  %2502 = vmatprep.subr.bf16.mxu1 %v3336_v8 }
0x13d0   :  { %2504 = vmatpush1.bf16.msra.mxu1 %v3340_v15 }
0x13d1   :  { %2472 = vmatpush1.bf16.msra.mxu0 %v3340_v15 }
0x147f   :  { %v972_v34 = vpop.f32.mrb[8].mxu0 }
0x1480   :  { %v976_v36 = vadd.f32 %v972_v34, %v3177_v17  ;;  %v2370_v37 = vpop.f32.mrb[9].mxu0 }
0x1482   :  { %2709 = vtanh.f32 %v976_v36  ;;  %v2170_v48 = vmul.f32 -1.442695, %v976_v36 }
0x1484   :  { %2711 = vpow2.f32 %v2170_v48 }
0x148c   :  { %v2710_v38 = vpop.eup %2709 }
0x148d   :  { %986 = vrot.lane.b32.xlu0 %v2710_v38, %s2990_s23 }
0x148e   :  { %v2712_v49 = vpop.eup %2711 }
0x148f   :  { %v3301_v39 = vpop.f32.mrb[14].mxu0  ;;  %v980_v50 = vadd.f32 1.0, %v2712_v49 }
0x1490   :  { %v3303_v40 = vpop.f32.mrb[15].mxu0 }
0x1491   :  { %2713 = vrcp.f32 %v980_v50 }
0x1493   :  { %v3305_v41 = vpop.f32.mrb[16].mxu0 }
0x1494   :  { %v3307_v42 = vpop.f32.mrb[17].mxu0 }
0x1497   :  { %v3309_v43 = vpop.f32.mrb[18].mxu0 }
0x1498   :  { %v3311_v44 = vpop.f32.mrb[19].mxu0 }
0x149b   :  { %v3313_v45 = vpop.f32.mrb[20].mxu0  ;;  %v2714_v51 = vpop.eup %2713 }
0x149c   :  { %v3315_v17 = vpop.f32.mrb[21].mxu0  ;;  %v984_v54 = vmul.f32 %v2714_v51, %v3262_v14  ;;  %v1154_v14 = vld [vmem:[#allocation10 + $0x78] sm:$0xff] }
0x149d   :  { %v3344_v16 = vpack.c.bf16 %v1154_v14, %v1152_v12  ;;  %v2003_v12 = vld [vmem:[#allocation11] sm:$0xff]  ;;  %v2004_v14 = vld [vmem:[#allocation11 + $0x8] sm:$0xff] }
0x149e   :  { %v2589_v19 = vpack.c.bf16 %v2004_v14, %v2003_v12 }
0x149f   :  { %v3317_v46 = vpop.f32.mrb[22].mxu0  ;;  %2474 = vmatprep.subr.bf16.mxu0 %v3344_v16  ;;  %2506 = vmatprep.subr.bf16.mxu1 %v3344_v16 }
0x14a0   :  { %v3319_v47 = vpop.f32.mrb[23].mxu0  ;;  %2476 = vmatpush1.bf16.msra.mxu0 %v3349_v21  ;;  %2508 = vmatpush1.bf16.msra.mxu1 %v3349_v21 }
0x14a1   :  { %2478 = vmatprep.subr.bf16.mxu0 %v3323_v58  ;;  %2510 = vmatprep.subr.bf16.mxu1 %v3323_v58 }
0x14ff   :  { %v987_v53 = vpop.permute.xlu0 %986 }
0x1500   :  { %v989_v9 = vmul.f32 %v2714_v51, %v987_v53 }
0x1502   :  { %991 = vrot.lane.b32.xlu1 %v989_v9, %s2990_s23 }
0x1574   :  { %v992_v55 = vpop.permute.xlu1 %991 }
0x1575   :  { %v994_v0 = vadd.f32 %v992_v55, %v984_v54 }
0x1577   :  { %2715 = vtanh.f32 %v994_v0 }
0x1581   :  { %v2716_v20 = vpop.eup %2715 }
0x1582   :  { %997 = vrot.lane.b32.xlu0 %v2716_v20, %s2990_s23  ;;  %v2006_v20 = vld [vmem:[#allocation11 + $0x18] sm:$0xff] }
0x15f4   :  { %v998_v22 = vpop.permute.xlu0 %997 }
0x15f5   :  { %v1000_v23 = vmul.f32 %v2714_v51, %v998_v22  ;;  %v2593_v22 = vpack.c.bf16 %v2006_v20, %v2005_v18 }
0x15f7   :  { %1022 = vrot.lane.b32.xlu1 %v1000_v23, %s2991_s3  ;;  %v2007_v23 = vld [vmem:[#allocation11 + $0x20] sm:$0xff] }
0x1669   :  { %v1023_v24 = vpop.permute.xlu1 %1022 }
0x166a   :  { %2178 = vmatmul.mubr.msk.f32.gmra.mrb[24].mxu0 %vm125_vm1, %v1023_v24  ;;  %v2008_v24 = vld [vmem:[#allocation11 + $0x28] sm:$0xff] }
0x166b   :  { %1222 = vmatprep.mubr.f32.mxu0 %v2989_v1  ;;  %v2597_v25 = vpack.c.bf16 %v2008_v24, %v2007_v23  ;;  %v1111_v24 = vadd.f32 %v3305_v41, %v3297_v33 }
0x166e   :  { %1223 = vmatmul.mubr.f32.vlgmr.msra.gmra.mrb[10].mxu0 %v2989_v1 }
0x166f   :  { %2480 = vmatpush1.bf16.msra.mxu0 %v3325_v62  ;;  %1328 = vmatprep.mubr.f32.mxu0 %v2989_v1 }
0x1670   :  { %2482 = vmatprep.subr.bf16.mxu0 %v3327_v63 }
0x1673   :  { %2484 = vmatpush1.bf16.msra.mxu0 %v3332_v6 }
0x1674   :  { %2486 = vmatprep.subr.bf16.mxu0 %v3336_v8 }
0x1677   :  { %2488 = vmatpush1.bf16.msra.mxu0 %v3340_v15 }
0x1678   :  { %2490 = vmatprep.subr.bf16.mxu0 %v3344_v16 }
0x167b   :  { %2492 = vmatpush1.bf16.msra.mxu0 %v3349_v21 }
0x167c   :  { %2590 = vmatprep.subr.bf16.mxu0 %v2589_v19 }
0x173d   :  { %v3371_v26 = vpop.f32.mrb[24].mxu0 }
0x173e   :  { %v3373_v28 = vpop.f32.mrb[25].mxu0 }
0x1741   :  { %v1224_v30 = vpop.f32.mrb[10].mxu0 }
0x1742   :  { %v1226_v31 = vpop.f32.mrb[11].mxu0  ;;  %v2605_v7 = vadd.f32 %v1224_v30, %v3297_v33  ;;  %v2009_v30 = vld [vmem:[#allocation11 + $0x30] sm:$0xff] }
0x1743   :  { %v2606_v32 = vadd.f32 %v1226_v31, %v3376_v29  ;;  %v2010_v31 = vld [vmem:[#allocation11 + $0x38] sm:$0xff] }
0x1744   :  { %v2179_v34 = vmul.f32 -1.442695, %v2605_v7 }
0x1745   :  { %2717 = vtanh.f32 %v2606_v32  ;;  %v2180_v53 = vmul.f32 -1.442695, %v2606_v32  ;;  %v2601_v32 = vpack.c.bf16 %v2010_v31, %v2009_v30 }
0x1746   :  { %2719 = vpow2.f32 %v2179_v34 }
0x174f   :  { %v2718_v35 = vpop.eup %2717 }
0x1750   :  { %1246 = vrot.lane.b32.xlu0 %v2718_v35, %s2991_s3  ;;  %v2720_v52 = vpop.eup %2719 }
0x1751   :  { %v1237_v36 = vadd.f32 1.0, %v2720_v52 }
0x1753   :  { %2721 = vrcp.f32 %v1237_v36 }
0x175d   :  { %v2722_v37 = vpop.eup %2721 }
0x175e   :  { %v1244_v27 = vmul.f32 0.0, %v2722_v37 }
0x17c2   :  { %v1247_v38 = vpop.permute.xlu0 %1246 }
0x17c3   :  { %v1249_v48 = vmul.f32 %v2722_v37, %v1247_v38 }
0x17c5   :  { %1251 = vrot.lane.b32.xlu1 %v1249_v48, %s2991_s3 }
0x1837   :  { %v1252_v49 = vpop.permute.xlu1 %1251 }
0x1838   :  { %v1254_v50 = vadd.f32 %v1252_v49, %v1244_v27 }
0x183a   :  { %2723 = vtanh.f32 %v1254_v50 }
0x183b   :  { %2725 = vpow2.f32 %v2180_v53  ;;  %v1107_v53 = vadd.f32 %v3303_v40, %v3376_v29 }
0x1844   :  { %v2724_v51 = vpop.eup %2723 }
0x1845   :  { %1257 = vrot.lane.b32.xlu0 %v2724_v51, %s2991_s3  ;;  %v2726_v9 = vpop.eup %2725  ;;  %v1105_v51 = vadd.f32 %v3301_v39, %v3297_v33 }
0x1846   :  { %v1238_v54 = vadd.f32 1.0, %v2726_v9 }
0x1848   :  { %2727 = vrcp.f32 %v1238_v54 }
0x1852   :  { %v2728_v55 = vpop.eup %2727 }
0x18b7   :  { %v1258_v0 = vpop.permute.xlu0 %1257 }
0x18b8   :  { %v1260_v13 = vmul.f32 %v2728_v55, %v1258_v0 }
0x18ba   :  { %2181 = vmatmul.mubr.msk.f32.vlgmr.msra.gmra.mrb[12].mxu0 %vm1155_vm2, %v1260_v13 }
0x18bb   :  { %2387 = vmatprep.mubr.msk.f32.mxu0 %vm1155_vm2, %v1260_v13  ;;  %2592 = vmatpush3.bf16.msra.mxu0 %v2589_v19 }
0x18bc   :  { %2594 = vmatprep.subr.bf16.mxu0 %v2593_v22 }
0x18bf   :  { %2596 = vmatpush3.bf16.msra.mxu0 %v2593_v22 }
0x18c0   :  { %2598 = vmatprep.subr.bf16.mxu0 %v2597_v25 }
0x18c3   :  { %2600 = vmatpush3.bf16.msra.mxu0 %v2597_v25  ;;  %v1113_v25 = vadd.f32 %v3307_v42, %v3376_v29 }
0x18c4   :  { %2602 = vmatprep.subr.bf16.mxu0 %v2601_v32 }
0x18c7   :  { %2604 = vmatpush3.bf16.msra.mxu0 %v2601_v32 }
0x198d   :  { %v1330_v56 = vpop.f32.mrb[12].mxu0 }
0x198e   :  { %v1332_v57 = vpop.f32.mrb[13].mxu0  ;;  %v2607_v61 = vadd.f32 %v1330_v56, %v3297_v33 }
0x198f   :  { %v2608_v59 = vadd.f32 %v1332_v57, %v3376_v29 }
0x1990   :  { %v2182_v2 = vmul.f32 -1.442695, %v2607_v61 }
0x1991   :  { %2729 = vtanh.f32 %v2608_v59  ;;  %v2183_v36 = vmul.f32 -1.442695, %v2608_v59 }
0x1992   :  { %2731 = vpow2.f32 %v2182_v2 }
0x199b   :  { %v2730_v60 = vpop.eup %2729 }
0x199c   :  { %1352 = vrot.lane.b32.xlu1 %v2730_v60, %s2991_s3  ;;  %v2732_v3 = vpop.eup %2731 }
0x199d   :  { %v1343_v4 = vadd.f32 1.0, %v2732_v3 }
0x199f   :  { %2733 = vrcp.f32 %v1343_v4 }
0x19a9   :  { %v2734_v5 = vpop.eup %2733 }
0x19aa   :  { %v1350_v35 = vmul.f32 %v2734_v5, %v1254_v50  ;;  %v3404_v50 = vld [vmem:[%s3525_s8] ss:$0 sm:$0xff]  ;;  %s2992_s8 = smov [#allocation13]  }
0x19ab   :  { %s2139_s28 = sshll.u32 %s2992_s8, 4  ;;  %s2140_s28 = int_to_ptr.vmem [resolvable:$true] %s2139_s28 }
0x19ac   :  { %s2945_s4 = scalar_lea.vmem %s2140_s28, 1024  ;;  %p2950_p7 = scmp.lt.s32.totalorder %s2140_s28, %s2140_s28 }
0x19ad   :  { %p2946_p6 = scmp.ne.s32.totalorder %s2140_s28, %s2945_s4  ;;  %p2951_p8 = scmp.lt.s32.totalorder %s2945_s4, %s2945_s4 }
0x19af   :  { %p2952_p9 = por %p2951_p8, %p2950_p7 }
0x19b1   :  { %p2953_p10 = pnand %p2952_p9, %p2946_p6 }
0x1a0e   :  { %v1353_v10 = vpop.permute.xlu1 %1352 }
0x1a0f   :  { %v1355_v11 = vmul.f32 %v2734_v5, %v1353_v10 }
0x1a11   :  { %1357 = vrot.lane.b32.xlu0 %v1355_v11, %s2991_s3 }
0x1a83   :  { %v1358_v7 = vpop.permute.xlu0 %1357 }
0x1a84   :  { %v1360_v34 = vadd.f32 %v1358_v7, %v1350_v35 }
0x1a86   :  { %2735 = vtanh.f32 %v1360_v34 }
0x1a87   :  { %2737 = vpow2.f32 %v2183_v36 }
0x1a90   :  { %v2736_v52 = vpop.eup %2735 }
0x1a91   :  { %1363 = vrot.lane.b32.xlu1 %v2736_v52, %s2991_s3  ;;  %v2738_v37 = vpop.eup %2737 }
0x1a92   :  { %v1344_v38 = vadd.f32 1.0, %v2738_v37 }
0x1a94   :  { %2739 = vrcp.f32 %v1344_v38 }
0x1a9e   :  { %v2740_v48 = vpop.eup %2739 }
0x1b03   :  { %v1364_v27 = vpop.permute.xlu1 %1363 }
0x1b04   :  { %v1366_v49 = vmul.f32 %v2740_v48, %v1364_v27 }
0x1b06   :  { %2184 = vmatmul.mubr.msk.f32.vlgmr.msra.gmra.mrb[8].mxu1 %vm1155_vm2, %v1366_v49  ;;  %2388 = vmatmul.mubr.msk.f32.vlgmr.msra.gmra.mrb[26].mxu0 %vm1155_vm2, %v1366_v49 }
0x1b07   :  { %2512 = vmatpush1.bf16.msra.mxu1 %v3325_v62  ;;  %1540 = vmatprep.mubr.f32.mxu1 %v2989_v1 }
0x1b08   :  { %2514 = vmatprep.subr.bf16.mxu1 %v3327_v63 }
0x1b0b   :  { %2516 = vmatpush1.bf16.msra.mxu1 %v3332_v6 }
0x1b0c   :  { %2518 = vmatprep.subr.bf16.mxu1 %v3336_v8 }
0x1b0f   :  { %2520 = vmatpush1.bf16.msra.mxu1 %v3340_v15 }
0x1b10   :  { %2522 = vmatprep.subr.bf16.mxu1 %v3344_v16 }
0x1b13   :  { %2524 = vmatpush1.bf16.msra.mxu1 %v3349_v21 }
0x1b14   :  { %2526 = vmatprep.subr.bf16.mxu1 %v3323_v58 }
0x1bd9   :  { %v1436_v9 = vpop.f32.mrb[8].mxu1  ;;  %v2389_v54 = vpop.f32.mrb[26].mxu0 }
0x1bda   :  { %v1441_v55 = vadd.f32 %v1436_v9, %v1105_v51  ;;  %v2093_v0 = vadd.f32 %v2389_v54, %v3404_v50  ;;  %v1438_v13 = vpop.f32.mrb[9].mxu1  ;;  %v2087_v56 = vpop.f32.mrb[27].mxu0 }
0x1bdb   :  { %v1442_v57 = vadd.f32 %v1438_v13, %v1107_v53  ;;  %v2088_v59 = vadd.f32 %v3404_v50, %v2087_v56  ;;  %v1117_v13 = vadd.f32 %v3309_v43, %v3297_v33  ;;  %v1119_v56 = vadd.f32 %v3311_v44, %v3376_v29 }
0x1bdc   :  { %2127 = vst [vmem:[#allocation13 + $0x8] sm:$0xff] %v2093_v0  ;;  %v2185_v39 = vmul.f32 -1.442695, %v1441_v55 }
0x1bdd   :  { %2741 = vtanh.f32 %v1442_v57  ;;  %2126 = vst [vmem:[#allocation13] sm:$0xff] %v2088_v59  ;;  %v2186_v14 = vmul.f32 -1.442695, %v1442_v57 }
0x1bde   :  { %2743 = vpow2.f32 %v2185_v39 }
0x1be7   :  { %v2742_v60 = vpop.eup %2741 }
0x1be8   :  { %1458 = vrot.lane.b32.xlu0 %v2742_v60, %s2991_s3  ;;  %v2744_v61 = vpop.eup %2743 }
0x1be9   :  { %v1449_v40 = vadd.f32 1.0, %v2744_v61 }
0x1beb   :  { %2745 = vrcp.f32 %v1449_v40 }
0x1bf5   :  { %v2746_v2 = vpop.eup %2745 }
0x1bf6   :  { %v1456_v5 = vmul.f32 %v2746_v2, %v1360_v34 }
0x1c5a   :  { %v1459_v3 = vpop.permute.xlu0 %1458 }
0x1c5b   :  { %v1461_v4 = vmul.f32 %v2746_v2, %v1459_v3 }
0x1c5d   :  { %1463 = vrot.lane.b32.xlu1 %v1461_v4, %s2991_s3 }
0x1ccf   :  { %v1464_v10 = vpop.permute.xlu1 %1463 }
0x1cd0   :  { %v1466_v11 = vadd.f32 %v1464_v10, %v1456_v5 }
0x1cd2   :  { %2747 = vtanh.f32 %v1466_v11 }
0x1cd3   :  { %2749 = vpow2.f32 %v2186_v14 }
0x1cdc   :  { %v2748_v12 = vpop.eup %2747 }
0x1cdd   :  { %1469 = vrot.lane.b32.xlu0 %v2748_v12, %s2991_s3  ;;  %v2750_v18 = vpop.eup %2749 }
0x1cde   :  { %v1450_v19 = vadd.f32 1.0, %v2750_v18 }
0x1ce0   :  { %2751 = vrcp.f32 %v1450_v19 }
0x1cea   :  { %v2752_v20 = vpop.eup %2751 }
0x1d4f   :  { %v1470_v22 = vpop.permute.xlu0 %1469 }
0x1d50   :  { %v1472_v23 = vmul.f32 %v2752_v20, %v1470_v22 }
0x1d52   :  { %2187 = vmatmul.mubr.msk.f32.vlgmr.msra.gmra.mrb[10].mxu1 %vm1155_vm2, %v1472_v23  ;;  %2390 = vmatprep.mubr.msk.f32.mxu0 %vm1155_vm2, %v1472_v23 }
0x1d53   :  { %2528 = vmatpush1.bf16.msra.mxu1 %v3325_v62  ;;  %1646 = vmatprep.mubr.f32.mxu1 %v2989_v1 }
0x1d54   :  { %2530 = vmatprep.subr.bf16.mxu1 %v3327_v63 }
0x1d57   :  { %2532 = vmatpush1.bf16.msra.mxu1 %v3332_v6 }
0x1d58   :  { %2534 = vmatprep.subr.bf16.mxu1 %v3336_v8 }
0x1d5b   :  { %2536 = vmatpush1.bf16.msra.mxu1 %v3340_v15 }
0x1d5c   :  { %2538 = vmatprep.subr.bf16.mxu1 %v3344_v16 }
0x1d5f   :  { %2540 = vmatpush1.bf16.msra.mxu1 %v3349_v21 }
0x1d60   :  { %2542 = vmatprep.subr.bf16.mxu1 %v3323_v58 }
0x1e25   :  { %v1542_v30 = vpop.f32.mrb[10].mxu1 }
0x1e26   :  { %v1547_v31 = vadd.f32 %v1542_v30, %v1111_v24  ;;  %v1544_v32 = vpop.f32.mrb[11].mxu1 }
0x1e27   :  { %v1548_v35 = vadd.f32 %v1544_v32, %v1113_v25  ;;  %v1123_v32 = vadd.f32 %v3313_v45, %v3297_v33 }
0x1e28   :  { %v2188_v34 = vmul.f32 -1.442695, %v1547_v31 }
0x1e29   :  { %2753 = vtanh.f32 %v1548_v35  ;;  %v2189_v51 = vmul.f32 -1.442695, %v1548_v35  ;;  %v1125_v35 = vadd.f32 %v3315_v17, %v3376_v29 }
0x1e2a   :  { %2755 = vpow2.f32 %v2188_v34 }
0x1e33   :  { %v2754_v7 = vpop.eup %2753 }
0x1e34   :  { %1564 = vrot.lane.b32.xlu1 %v2754_v7, %s2991_s3  ;;  %v2756_v52 = vpop.eup %2755 }
0x1e35   :  { %v1555_v36 = vadd.f32 1.0, %v2756_v52 }
0x1e37   :  { %2757 = vrcp.f32 %v1555_v36 }
0x1e41   :  { %v2758_v37 = vpop.eup %2757 }
0x1e42   :  { %v1562_v41 = vmul.f32 %v2758_v37, %v1466_v11 }
0x1ea6   :  { %v1565_v38 = vpop.permute.xlu1 %1564 }
0x1ea7   :  { %v1567_v48 = vmul.f32 %v2758_v37, %v1565_v38 }
0x1ea9   :  { %1569 = vrot.lane.b32.xlu0 %v1567_v48, %s2991_s3 }
0x1f1b   :  { %v1570_v42 = vpop.permute.xlu0 %1569 }
0x1f1c   :  { %v1572_v27 = vadd.f32 %v1570_v42, %v1562_v41 }
0x1f1e   :  { %2759 = vtanh.f32 %v1572_v27 }
0x1f1f   :  { %2761 = vpow2.f32 %v2189_v51 }
0x1f28   :  { %v2760_v49 = vpop.eup %2759 }
0x1f29   :  { %1575 = vrot.lane.b32.xlu1 %v2760_v49, %s2991_s3  ;;  %v2762_v53 = vpop.eup %2761 }
0x1f2a   :  { %v1556_v9 = vadd.f32 1.0, %v2762_v53 }
0x1f2c   :  { %2763 = vrcp.f32 %v1556_v9 }
0x1f36   :  { %v2764_v54 = vpop.eup %2763 }
0x1f9b   :  { %v1576_v55 = vpop.permute.xlu1 %1575 }
0x1f9c   :  { %v1578_v0 = vmul.f32 %v2764_v54, %v1576_v55 }
0x1f9e   :  { %2190 = vmatmul.mubr.msk.f32.vlgmr.msra.gmra.mrb[12].mxu1 %vm1155_vm2, %v1578_v0  ;;  %2391 = vmatmul.mubr.msk.f32.gmra.mrb[28].mxu0 %vm1155_vm2, %v1578_v0 }
0x1f9f   :  { %2544 = vmatpush1.bf16.msra.mxu1 %v3325_v62  ;;  %1752 = vmatprep.mubr.f32.mxu1 %v2989_v1 }
0x1fa0   :  { %2546 = vmatprep.subr.bf16.mxu1 %v3327_v63 }
0x1fa3   :  { %2548 = vmatpush1.bf16.msra.mxu1 %v3332_v6 }
0x1fa4   :  { %2550 = vmatprep.subr.bf16.mxu1 %v3336_v8 }
0x1fa7   :  { %2552 = vmatpush1.bf16.msra.mxu1 %v3340_v15 }
0x1fa8   :  { %2554 = vmatprep.subr.bf16.mxu1 %v3344_v16 }
0x1fab   :  { %2556 = vmatpush1.bf16.msra.mxu1 %v3349_v21 }
0x1fac   :  { %2558 = vmatprep.subr.bf16.mxu1 %v3323_v58 }
0x2071   :  { %v1648_v57 = vpop.f32.mrb[12].mxu1  ;;  %v2392_v59 = vpop.f32.mrb[28].mxu0 }
0x2072   :  { %v1653_v60 = vadd.f32 %v1648_v57, %v1117_v13  ;;  %v2103_v39 = vadd.f32 %v2392_v59, %v3404_v50  ;;  %v1650_v61 = vpop.f32.mrb[13].mxu1  ;;  %v2097_v40 = vpop.f32.mrb[29].mxu0 }
0x2073   :  { %v1654_v2 = vadd.f32 %v1650_v61, %v1119_v56  ;;  %v2098_v3 = vadd.f32 %v3404_v50, %v2097_v40  ;;  %v1129_v56 = vadd.f32 %v3317_v46, %v3297_v33 }
0x2074   :  { %2129 = vst [vmem:[#allocation13 + $0x18] sm:$0xff] %v2103_v39  ;;  %v2191_v43 = vmul.f32 -1.442695, %v1653_v60 }
0x2075   :  { %2765 = vtanh.f32 %v1654_v2  ;;  %2128 = vst [vmem:[#allocation13 + $0x10] sm:$0xff] %v2098_v3  ;;  %v2192_v22 = vmul.f32 -1.442695, %v1654_v2 }
0x2076   :  { %2767 = vpow2.f32 %v2191_v43 }
0x207f   :  { %v2766_v4 = vpop.eup %2765 }
0x2080   :  { %1670 = vrot.lane.b32.xlu0 %v2766_v4, %s2991_s3  ;;  %v2768_v5 = vpop.eup %2767 }
0x2081   :  { %v1661_v44 = vadd.f32 1.0, %v2768_v5 }
0x2083   :  { %2769 = vrcp.f32 %v1661_v44 }
0x208d   :  { %v2770_v10 = vpop.eup %2769 }
0x208e   :  { %v1668_v14 = vmul.f32 %v2770_v10, %v1572_v27 }
0x20f2   :  { %v1671_v11 = vpop.permute.xlu0 %1670 }
0x20f3   :  { %v1673_v12 = vmul.f32 %v2770_v10, %v1671_v11 }
0x20f5   :  { %1675 = vrot.lane.b32.xlu1 %v1673_v12, %s2991_s3 }
0x2167   :  { %v1676_v18 = vpop.permute.xlu1 %1675 }
0x2168   :  { %v1678_v19 = vadd.f32 %v1676_v18, %v1668_v14  ;;  %v1135_v18 = vadd.f32 %v3371_v26, %v3297_v33 }
0x216a   :  { %2771 = vtanh.f32 %v1678_v19 }
0x216b   :  { %2773 = vpow2.f32 %v2192_v22 }
0x2174   :  { %v2772_v20 = vpop.eup %2771 }
0x2175   :  { %1681 = vrot.lane.b32.xlu0 %v2772_v20, %s2991_s3  ;;  %v2774_v23 = vpop.eup %2773 }
0x2176   :  { %v1662_v24 = vadd.f32 1.0, %v2774_v23 }
0x2178   :  { %2775 = vrcp.f32 %v1662_v24 }
0x2182   :  { %v2776_v25 = vpop.eup %2775 }
0x21e7   :  { %v1682_v30 = vpop.permute.xlu0 %1681 }
0x21e8   :  { %v1684_v31 = vmul.f32 %v2776_v25, %v1682_v30 }
0x21ea   :  { %2193 = vmatmul.mubr.msk.f32.vlgmr.msra.gmra.mrb[14].mxu1 %vm1155_vm2, %v1684_v31  ;;  %2393 = vmatprep.mubr.msk.f32.mxu0 %vm1155_vm2, %v1684_v31 }
0x21eb   :  { %2560 = vmatpush1.bf16.msra.mxu1 %v3325_v62  ;;  %1858 = vmatprep.mubr.f32.mxu1 %v2989_v1 }
0x21ec   :  { %2562 = vmatprep.subr.bf16.mxu1 %v3327_v63 }
0x21ef   :  { %2564 = vmatpush1.bf16.msra.mxu1 %v3332_v6 }
0x21f0   :  { %2566 = vmatprep.subr.bf16.mxu1 %v3336_v8 }
0x21f3   :  { %2568 = vmatpush1.bf16.msra.mxu1 %v3340_v15 }
0x21f4   :  { %2570 = vmatprep.subr.bf16.mxu1 %v3344_v16 }
0x21f7   :  { %2572 = vmatpush1.bf16.msra.mxu1 %v3349_v21 }
0x21f8   :  { %2574 = vmatprep.subr.bf16.mxu1 %v3323_v58 }
0x22bd   :  { %v1754_v7 = vpop.f32.mrb[14].mxu1 }
0x22be   :  { %v1759_v34 = vadd.f32 %v1754_v7, %v1123_v32  ;;  %v1756_v52 = vpop.f32.mrb[15].mxu1 }
0x22bf   :  { %v1760_v36 = vadd.f32 %v1756_v52, %v1125_v35 }
0x22c0   :  { %v2194_v38 = vmul.f32 -1.442695, %v1759_v34 }
0x22c1   :  { %2777 = vtanh.f32 %v1760_v36  ;;  %v2195_v53 = vmul.f32 -1.442695, %v1760_v36 }
0x22c2   :  { %2779 = vpow2.f32 %v2194_v38 }
0x22cb   :  { %v2778_v37 = vpop.eup %2777 }
0x22cc   :  { %1776 = vrot.lane.b32.xlu1 %v2778_v37, %s2991_s3  ;;  %v2780_v48 = vpop.eup %2779 }
0x22cd   :  { %v1767_v41 = vadd.f32 1.0, %v2780_v48 }
0x22cf   :  { %2781 = vrcp.f32 %v1767_v41 }
0x22d9   :  { %v2782_v58 = vpop.eup %2781 }
0x22da   :  { %v1774_v45 = vmul.f32 %v2782_v58, %v1678_v19  ;;  %v1137_v19 = vadd.f32 %v3373_v28, %v3376_v29 }
0x233e   :  { %v1777_v42 = vpop.permute.xlu1 %1776 }
0x233f   :  { %v1779_v27 = vmul.f32 %v2782_v58, %v1777_v42 }
0x2341   :  { %1781 = vrot.lane.b32.xlu0 %v1779_v27, %s2991_s3 }
0x23b3   :  { %v1782_v17 = vpop.permute.xlu0 %1781 }
0x23b4   :  { %v1784_v49 = vadd.f32 %v1782_v17, %v1774_v45 }
0x23b6   :  { %2783 = vtanh.f32 %v1784_v49 }
0x23b7   :  { %2785 = vpow2.f32 %v2195_v53 }
0x23c0   :  { %v2784_v51 = vpop.eup %2783 }
0x23c1   :  { %1787 = vrot.lane.b32.xlu1 %v2784_v51, %s2991_s3  ;;  %v2786_v9 = vpop.eup %2785 }
0x23c2   :  { %v1768_v54 = vadd.f32 1.0, %v2786_v9 }
0x23c4   :  { %2787 = vrcp.f32 %v1768_v54 }
0x23ce   :  { %v2788_v55 = vpop.eup %2787 }
0x2433   :  { %v1788_v0 = vpop.permute.xlu1 %1787 }
0x2434   :  { %v1790_v13 = vmul.f32 %v2788_v55, %v1788_v0 }
0x2436   :  { %2196 = vmatmul.mubr.msk.f32.vlgmr.msra.gmra.mrb[16].mxu1 %vm1155_vm2, %v1790_v13  ;;  %2394 = vmatmul.mubr.msk.f32.gmra.mrb[30].mxu0 %vm1155_vm2, %v1790_v13 }
0x2437   :  { %2576 = vmatpush1.bf16.msra.mxu1 %v3325_v62  ;;  %1964 = vmatprep.mubr.f32.mxu1 %v2989_v1  ;;  %v1131_v62 = vadd.f32 %v3319_v47, %v3376_v29 }
0x2438   :  { %2578 = vmatprep.subr.bf16.mxu1 %v3327_v63 }
0x243b   :  { %2580 = vmatpush1.bf16.msra.mxu1 %v3332_v6 }
0x243c   :  { %2582 = vmatprep.subr.bf16.mxu1 %v3336_v8 }
0x243f   :  { %2584 = vmatpush1.bf16.msra.mxu1 %v3340_v15 }
0x2440   :  { %2586 = vmatprep.subr.bf16.mxu1 %v3344_v16 }
0x2443   :  { %2588 = vmatpush1.bf16.msra.mxu1 %v3349_v21 }
0x2509   :  { %v1860_v57 = vpop.f32.mrb[16].mxu1  ;;  %v2395_v1 = vpop.f32.mrb[30].mxu0 }
0x250a   :  { %v1865_v59 = vadd.f32 %v1860_v57, %v1129_v56  ;;  %v2113_v63 = vadd.f32 %v2395_v1, %v3404_v50  ;;  %v1862_v6 = vpop.f32.mrb[17].mxu1  ;;  %v2107_v60 = vpop.f32.mrb[31].mxu0 }
0x250b   :  { %v1866_v8 = vadd.f32 %v1862_v6, %v1131_v62  ;;  %v2108_v15 = vadd.f32 %v3404_v50, %v2107_v60 }
0x250c   :  { %2131 = vst [vmem:[#allocation13 + $0x28] sm:$0xff] %v2113_v63  ;;  %v2197_v46 = vmul.f32 -1.442695, %v1865_v59 }
0x250d   :  { %2789 = vtanh.f32 %v1866_v8  ;;  %2130 = vst [vmem:[#allocation13 + $0x20] sm:$0xff] %v2108_v15  ;;  %v2198_v5 = vmul.f32 -1.442695, %v1866_v8 }
0x250e   :  { %2791 = vpow2.f32 %v2197_v46 }
0x2517   :  { %v2790_v16 = vpop.eup %2789 }
0x2518   :  { %1882 = vrot.lane.b32.xlu0 %v2790_v16, %s2991_s3  ;;  %v2792_v21 = vpop.eup %2791 }
0x2519   :  { %v1873_v47 = vadd.f32 1.0, %v2792_v21 }
0x251b   :  { %2793 = vrcp.f32 %v1873_v47 }
0x2525   :  { %v2794_v39 = vpop.eup %2793 }
0x2526   :  { %v1880_v2 = vmul.f32 %v2794_v39, %v1784_v49 }
0x258a   :  { %v1883_v61 = vpop.permute.xlu0 %1882 }
0x258b   :  { %v1885_v40 = vmul.f32 %v2794_v39, %v1883_v61 }
0x258d   :  { %1887 = vrot.lane.b32.xlu1 %v1885_v40, %s2991_s3 }
0x25ff   :  { %v1888_v3 = vpop.permute.xlu1 %1887 }
0x2600   :  { %v1890_v4 = vadd.f32 %v1888_v3, %v1880_v2 }
0x2602   :  { %2795 = vtanh.f32 %v1890_v4 }
0x2603   :  { %2797 = vpow2.f32 %v2198_v5 }
0x260c   :  { %v2796_v43 = vpop.eup %2795 }
0x260d   :  { %1893 = vrot.lane.b32.xlu0 %v2796_v43, %s2991_s3  ;;  %v2798_v44 = vpop.eup %2797 }
0x260e   :  { %v1874_v10 = vadd.f32 1.0, %v2798_v44 }
0x2610   :  { %2799 = vrcp.f32 %v1874_v10 }
0x261a   :  { %v2800_v11 = vpop.eup %2799 }
0x267f   :  { %v1894_v12 = vpop.permute.xlu0 %1893 }
0x2680   :  { %v1896_v14 = vmul.f32 %v2800_v11, %v1894_v12 }
0x2682   :  { %2199 = vmatmul.mubr.msk.f32.vlgmr.msra.gmra.mrb[18].mxu1 %vm1155_vm2, %v1896_v14  ;;  %2396 = vmatprep.mubr.msk.f32.mxu0 %vm1155_vm2, %v1896_v14 }
0x2755   :  { %v1966_v20 = vpop.f32.mrb[18].mxu1 }
0x2756   :  { %v1971_v22 = vadd.f32 %v1966_v20, %v1135_v18  ;;  %v1968_v23 = vpop.f32.mrb[19].mxu1 }
0x2757   :  { %v1972_v24 = vadd.f32 %v1968_v23, %v1137_v19 }
0x2758   :  { %v2200_v30 = vmul.f32 -1.442695, %v1971_v22 }
0x2759   :  { %2801 = vtanh.f32 %v1972_v24  ;;  %v2201_v52 = vmul.f32 -1.442695, %v1972_v24 }
0x275a   :  { %2803 = vpow2.f32 %v2200_v30 }
0x2763   :  { %v2802_v25 = vpop.eup %2801 }
0x2764   :  { %1988 = vrot.lane.b32.xlu1 %v2802_v25, %s2991_s3  ;;  %v2804_v31 = vpop.eup %2803 }
0x2765   :  { %v1979_v32 = vadd.f32 1.0, %v2804_v31 }
0x2767   :  { %2805 = vrcp.f32 %v1979_v32 }
0x2771   :  { %v2806_v35 = vpop.eup %2805 }
0x2772   :  { %v1986_v33 = vmul.f32 %v2806_v35, %v1890_v4 }
0x27d6   :  { %v1989_v7 = vpop.permute.xlu1 %1988 }
0x27d7   :  { %v1991_v34 = vmul.f32 %v2806_v35, %v1989_v7 }
0x27d9   :  { %1993 = vrot.lane.b32.xlu0 %v1991_v34, %s2991_s3 }
0x284b   :  { %v1994_v26 = vpop.permute.xlu0 %1993 }
0x284c   :  { %v1996_v28 = vadd.f32 %v1994_v26, %v1986_v33 }
0x284e   :  { %2807 = vtanh.f32 %v1996_v28 }
0x284f   :  { %2809 = vpow2.f32 %v2201_v52 }
0x2858   :  { %v2808_v29 = vpop.eup %2807 }
0x2859   :  { %1999 = vrot.lane.b32.xlu1 %v2808_v29, %s2991_s3  ;;  %v2810_v36 = vpop.eup %2809 }
0x285a   :  { %v1980_v37 = vadd.f32 1.0, %v2810_v36 }
0x285c   :  { %2811 = vrcp.f32 %v1980_v37 }
0x2866   :  { %v2812_v38 = vpop.eup %2811 }
0x28cb   :  { %v2000_v48 = vpop.permute.xlu1 %1999 }
0x28cc   :  { %v2002_v41 = vmul.f32 %v2812_v38, %v2000_v48 }
0x28ce   :  { %2397 = vmatmul.mubr.msk.f32.gmra.mrb[32].mxu0 %vm1155_vm2, %v2002_v41 }
0x29a1   :  { %v2398_v58 = vpop.f32.mrb[32].mxu0 }
0x29a2   :  { %v2123_v42 = vadd.f32 %v2398_v58, %v3404_v50  ;;  %v2117_v27 = vpop.f32.mrb[33].mxu0 }
0x29a3   :  { %v2118_v45 = vadd.f32 %v3404_v50, %v2117_v27 }
0x29a4   :  { %2133 = vst [vmem:[#allocation13 + $0x38] sm:$0xff] %v2123_v42 }
0x29a5   :  { %2132 = vst [vmem:[#allocation13 + $0x30] sm:$0xff] %v2118_v45 }
0x29a6   :  { %2956 = shalt.err (!%p2953_p10)
}
0x29a7   :  { %s2957_s30 = scalar_lea.hbm %s3526_s9, 1024 }
0x29a8   :  { %p2958_p11 = scmp.ne.s32.totalorder %s3526_s9, %s2957_s30  ;;  %p2961_p12 = scmp.lt.u32.totalorder %s2957_s30, %s3526_s9 }
0x29aa   :  { %p2963_p13 = pnand %p2961_p12, %p2958_p11 }
0x29ac   :  { %2966 = shalt.err (!%p2963_p13)
}
0x29ad   :  { %2145 = dma.vmem_to_hbm [thread:$0]  %s2140_s28, 1024, %s3526_s9, [#allocation4], %s2978_s19, %s2978_s19, %s2979_s20  }
0x29ae   :  { %2975 = dma.done.wait [#allocation4], 1024  }
0x29af   :  { %2976 = vsyncadd [#allocation4], 4294966272 }
0x29b0   :  { %2149 = vsyncpa [#allocation3], 1 }
0x29b1   :  { %2150 = vsyncpa [#allocation6], 1 }
0x29b2   :  { %2151 = vsyncpa [#allocation9], 1 }
0x29b3   :  { %2152 = vsyncpa [#allocation12], 1 }
0x29b4   :  { %2153 = vsyncpa [#allocation4], 1 }

</bundles_post_ra>
